<compile_context>
chip_gen: v7x
topology: tpu7x:2x2x1
jax: 0.10.0
libtpu: 0.0.40
codegen_flags: <defaults>
</compile_context>

<pallas_src>
import math

import jax
import jax.numpy as jnp
from jax.experimental import pallas as pl
from jax.experimental.pallas import tpu as pltpu


# ------------------------------ Pallas kernel -------------------------------

def embed_atten_seq_kernel(
        x_ref,                                   # (S*B, D)   flattened input sequence
        wir_ref, wiz_ref, win_ref,               # (D, H)     per-gate input weights (pre-transposed)
        whr_ref, whz_ref, whn_ref,               # (H, H)     per-gate hidden weights (pre-transposed)
        br_ref, bz_ref, bin_ref, bhn_ref,        # (1, H)     merged r/z biases, split n biases
        wq_ref, wk_ref, wv_ref,                  # (H, H)
        bq_ref, bk_ref, bv_ref,                  # (1, H)
        wo_ref, bo_ref,                          # (H, dim_out), (1, dim_out)
        o_ref,                                   # (B, dim_out) output
        lat_ref):                                # VMEM scratch (B, S, H)
    B, S, H = lat_ref.shape

    # ---- GRU: hoisted input projections (no sequential dependence) ----
    x_all = x_ref[...]                                                          # (S*B, D)
    gi_r = jnp.dot(x_all, wir_ref[...], preferred_element_type=jnp.float32) + br_ref[...]
    gi_z = jnp.dot(x_all, wiz_ref[...], preferred_element_type=jnp.float32) + bz_ref[...]
    gi_n = jnp.dot(x_all, win_ref[...], preferred_element_type=jnp.float32) + bin_ref[...]

    wh_r = whr_ref[...]
    wh_z = whz_ref[...]
    wh_n = whn_ref[...]
    b_hn = bhn_ref[...]

    # ---- GRU: sequential recurrence, fully unrolled (S static & small) ----
    h = jnp.zeros((B, H), jnp.float32)
    for t in range(S):
        lo = t * B                                   # static slice into the hoisted projections
        hr = jnp.dot(h, wh_r, preferred_element_type=jnp.float32)
        hz = jnp.dot(h, wh_z, preferred_element_type=jnp.float32)
        hn = jnp.dot(h, wh_n, preferred_element_type=jnp.float32) + b_hn
        r = jax.nn.sigmoid(gi_r[lo:lo + B, :] + hr)
        z = jax.nn.sigmoid(gi_z[lo:lo + B, :] + hz)
        n = jnp.tanh(gi_n[lo:lo + B, :] + r * hn)
        h = (1.0 - z) * n + z * h
        lat_ref[:, t, :] = h                         # latent kept on-chip, batch-major for attention

    # ---- TransformerAttn + sum over seq + Linear + Tanh (all in VMEM) ----
    x = lat_ref[...]                                 # (B, S, H)
    q = jnp.einsum('bsh,hk->bsk', x, wq_ref[...],
                   preferred_element_type=jnp.float32) + bq_ref[...]
    k = jnp.einsum('bsh,hk->bsk', x, wk_ref[...],
                   preferred_element_type=jnp.float32) + bk_ref[...]
    v = jnp.einsum('bsh,hk->bsk', x, wv_ref[...],
                   preferred_element_type=jnp.float32) + bv_ref[...]

    scores = jnp.einsum('bqh,bkh->bqk', q, k,
                        preferred_element_type=jnp.float32) * (1.0 / math.sqrt(H))
    m = jnp.max(scores, axis=-1, keepdims=True)
    p = jnp.exp(scores - m)
    probs = p * pl.reciprocal(jnp.sum(p, axis=-1, keepdims=True), approx=True)

    ctx = jnp.einsum('bqk,bkh->bqh', probs, v,
                     preferred_element_type=jnp.float32)            # (B, S, H)
    summed = jnp.sum(ctx, axis=1)                                   # (B, H)

    emb = jnp.tanh(jnp.dot(summed, wo_ref[...],
                           preferred_element_type=jnp.float32) + bo_ref[...])
    o_ref[...] = emb.astype(o_ref.dtype)


# -------------------------------- wrappers -----------------------------------

def prepare_params(params):
    """One-time weight preparation: gate splits, transposes, bias merges, 2-D bias reshapes."""
    H = params['w_hh'].shape[1]
    dim_out = params['w_out'].shape[0]
    w_ih, w_hh = params['w_ih'], params['w_hh']
    b_ih, b_hh = params['b_ih'], params['b_hh']
    return {
        'wi_r': w_ih[0:H].T,            'wi_z': w_ih[H:2 * H].T,     'wi_n': w_ih[2 * H:3 * H].T,
        'wh_r': w_hh[0:H].T,            'wh_z': w_hh[H:2 * H].T,     'wh_n': w_hh[2 * H:3 * H].T,
        'b_r': (b_ih[0:H] + b_hh[0:H]).reshape(1, H),                # r gate: input+hidden bias merge
        'b_z': (b_ih[H:2 * H] + b_hh[H:2 * H]).reshape(1, H),        # z gate: input+hidden bias merge
        'b_in': b_ih[2 * H:3 * H].reshape(1, H),                     # n gate: input bias (outside r*)
        'b_hn': b_hh[2 * H:3 * H].reshape(1, H),                     # n gate: hidden bias (inside r*)
        'wq': params['w_q'].T, 'wk': params['w_k'].T, 'wv': params['w_v'].T,
        'bq': params['b_q'].reshape(1, H),
        'bk': params['b_k'].reshape(1, H),
        'bv': params['b_v'].reshape(1, H),
        'wo': params['w_out'].T,
        'bo': params['b_out'].reshape(1, dim_out),
    }


@jax.jit
def embed_atten_seq_forward(seqs, prep):
    """seqs: [S, B, D_in] f32, prep: prepare_params(...) -> [B, dim_out] f32."""
    S, B, D = seqs.shape
    H = prep['wh_r'].shape[0]
    dim_out = prep['wo'].shape[1]
    x_flat = seqs.reshape(S * B, D)      # contiguous leading-axis merge (free in XLA)

    return pl.pallas_call(
        embed_atten_seq_kernel,
        out_shape=jax.ShapeDtypeStruct((B, dim_out), jnp.float32),
        scratch_shapes=[pltpu.VMEM((B, S, H), jnp.float32)],
    )(x_flat,
      prep['wi_r'], prep['wi_z'], prep['wi_n'],
      prep['wh_r'], prep['wh_z'], prep['wh_n'],
      prep['b_r'], prep['b_z'], prep['b_in'], prep['b_hn'],
      prep['wq'], prep['wk'], prep['wv'],
      prep['bq'], prep['bk'], prep['bv'],
      prep['wo'], prep['bo'])


# --------------------------- pure-JAX reference -----------------------------

def embed_atten_seq_reference(seqs, params):
    S, B, D = seqs.shape
    H = params['w_hh'].shape[1]

    w_ih, w_hh = params['w_ih'], params['w_hh']
    b_ih, b_hh = params['b_ih'], params['b_hh']

    def step(h, x):
        gi = x @ w_ih.T + b_ih
        gh = h @ w_hh.T + b_hh
        i_r, i_z, i_n = gi[:, :H], gi[:, H:2 * H], gi[:, 2 * H:]
        h_r, h_z, h_n = gh[:, :H], gh[:, H:2 * H], gh[:, 2 * H:]
        r = jax.nn.sigmoid(i_r + h_r)
        z = jax.nn.sigmoid(i_z + h_z)
        n = jnp.tanh(i_n + r * h_n)
        h_new = (1.0 - z) * n + z * h
        return h_new, h_new

    h0 = jnp.zeros((B, H), jnp.float32)
    _, latent = jax.lax.scan(step, h0, seqs)        # (S, B, H)

    x = jnp.transpose(latent, (1, 0, 2))            # (B, S, H)
    q = x @ params['w_q'].T + params['b_q']
    k = x @ params['w_k'].T + params['b_k']
    v = x @ params['w_v'].T + params['b_v']
    w = jnp.einsum('bqh,bkh->bqk', q, k) / math.sqrt(H)
    w = jax.nn.softmax(w, axis=-1)
    ctx = jnp.einsum('bqk,bkh->bqh', w, v)
    summed = ctx.sum(axis=1)                        # (B, H)
    return jnp.tanh(summed @ params['w_out'].T + params['b_out'])


# --------------------------------- main -------------------------------------

def make_params(key, dim_seq_in, rnn_out, dim_out):
    H = rnn_out
    ks = jax.random.split(key, 10)
    k_gru = 1.0 / math.sqrt(H)
    xav = math.sqrt(6.0 / (H + H))
    k_lin = 1.0 / math.sqrt(H)
    return {
        'w_ih': jax.random.uniform(ks[0], (3 * H, dim_seq_in), jnp.float32, -k_gru, k_gru),
        'w_hh': jax.random.uniform(ks[1], (3 * H, H), jnp.float32, -k_gru, k_gru),
        'b_ih': jax.random.uniform(ks[2], (3 * H,), jnp.float32, -k_gru, k_gru),
        'b_hh': jax.random.uniform(ks[3], (3 * H,), jnp.float32, -k_gru, k_gru),
        'w_q': jax.random.uniform(ks[4], (H, H), jnp.float32, -xav, xav),
        'w_k': jax.random.uniform(ks[5], (H, H), jnp.float32, -xav, xav),
        'w_v': jax.random.uniform(ks[6], (H, H), jnp.float32, -xav, xav),
        'b_q': jnp.full((H,), 0.01, jnp.float32),
        'b_k': jnp.full((H,), 0.01, jnp.float32),
        'b_v': jnp.full((H,), 0.01, jnp.float32),
        'w_out': jax.random.uniform(ks[7], (dim_out, H), jnp.float32, -k_lin, k_lin),
        'b_out': jax.random.uniform(ks[8], (dim_out,), jnp.float32, -k_lin, k_lin),
    }


if __name__ == "__main__":
    S, B, D_IN, RNN_OUT, DIM_OUT = 8, 2, 5, 32, 16

    key = jax.random.PRNGKey(0)
    k_x, k_p = jax.random.split(key)
    seqs = jax.random.normal(k_x, (S, B, D_IN), jnp.float32)
    params = make_params(k_p, D_IN, RNN_OUT, DIM_OUT)

    prep = prepare_params(params)      # one-time weight prep, NOT repeated per forward call

    out = embed_atten_seq_forward(seqs, prep)
    out = jax.block_until_ready(out)

    ref = embed_atten_seq_reference(seqs, params)
    assert out.shape == (B, DIM_OUT)
    assert jnp.allclose(out, ref, atol=2e-3, rtol=2e-3), "mismatch vs pure-JAX reference"

    print("KERNEL_OK")
</pallas_src>

<mosaic_0001>
module attributes {stable_mosaic.version = 11 : i64} {
  func.func @embed_atten_seq_kernel(%arg0: memref<16x5xf32, #tpu.memory_space<vmem>>, %arg1: memref<5x32xf32, #tpu.memory_space<vmem>>, %arg2: memref<5x32xf32, #tpu.memory_space<vmem>>, %arg3: memref<5x32xf32, #tpu.memory_space<vmem>>, %arg4: memref<32x32xf32, #tpu.memory_space<vmem>>, %arg5: memref<32x32xf32, #tpu.memory_space<vmem>>, %arg6: memref<32x32xf32, #tpu.memory_space<vmem>>, %arg7: memref<1x32xf32, #tpu.memory_space<vmem>>, %arg8: memref<1x32xf32, #tpu.memory_space<vmem>>, %arg9: memref<1x32xf32, #tpu.memory_space<vmem>>, %arg10: memref<1x32xf32, #tpu.memory_space<vmem>>, %arg11: memref<32x32xf32, #tpu.memory_space<vmem>>, %arg12: memref<32x32xf32, #tpu.memory_space<vmem>>, %arg13: memref<32x32xf32, #tpu.memory_space<vmem>>, %arg14: memref<1x32xf32, #tpu.memory_space<vmem>>, %arg15: memref<1x32xf32, #tpu.memory_space<vmem>>, %arg16: memref<1x32xf32, #tpu.memory_space<vmem>>, %arg17: memref<32x16xf32, #tpu.memory_space<vmem>>, %arg18: memref<1x16xf32, #tpu.memory_space<vmem>>, %arg19: memref<2x16xf32, #tpu.memory_space<vmem>>, %arg20: memref<2x8x32xf32, #tpu.memory_space<vmem>>) attributes {dimension_semantics = [], scalar_prefetch = 0 : i64, scratch_operands = 1 : i64, tpu.core_type = #tpu.core_type<tc>} {
    %c0 = arith.constant 0 : index
    %c0_0 = arith.constant 0 : index
    %0 = vector.load %arg0[%c0, %c0_0] : memref<16x5xf32, #tpu.memory_space<vmem>>, vector<16x5xf32>
    %c0_1 = arith.constant 0 : index
    %c0_2 = arith.constant 0 : index
    %1 = vector.load %arg1[%c0_1, %c0_2] : memref<5x32xf32, #tpu.memory_space<vmem>>, vector<5x32xf32>
    %cst = arith.constant dense<0.000000e+00> : vector<16x32xf32>
    %2 = tpu.matmul %0, %1, %cst {dimension_numbers = #tpu.dot_dimension_numbers<[1], [0], [0], [1], [0, 0, 1, 1], [], []>} : vector<16x5xf32>, vector<5x32xf32>, vector<16x32xf32> -> vector<16x32xf32>
    %c0_3 = arith.constant 0 : index
    %c0_4 = arith.constant 0 : index
    %3 = vector.load %arg7[%c0_3, %c0_4] : memref<1x32xf32, #tpu.memory_space<vmem>>, vector<1x32xf32>
    %4 = vector.broadcast %3 : vector<1x32xf32> to vector<16x32xf32>
    %5 = arith.addf %2, %4 : vector<16x32xf32>
    %c0_5 = arith.constant 0 : index
    %c0_6 = arith.constant 0 : index
    %6 = vector.load %arg2[%c0_5, %c0_6] : memref<5x32xf32, #tpu.memory_space<vmem>>, vector<5x32xf32>
    %cst_7 = arith.constant dense<0.000000e+00> : vector<16x32xf32>
    %7 = tpu.matmul %0, %6, %cst_7 {dimension_numbers = #tpu.dot_dimension_numbers<[1], [0], [0], [1], [0, 0, 1, 1], [], []>} : vector<16x5xf32>, vector<5x32xf32>, vector<16x32xf32> -> vector<16x32xf32>
    %c0_8 = arith.constant 0 : index
    %c0_9 = arith.constant 0 : index
    %8 = vector.load %arg8[%c0_8, %c0_9] : memref<1x32xf32, #tpu.memory_space<vmem>>, vector<1x32xf32>
    %9 = vector.broadcast %8 : vector<1x32xf32> to vector<16x32xf32>
    %10 = arith.addf %7, %9 : vector<16x32xf32>
    %c0_10 = arith.constant 0 : index
    %c0_11 = arith.constant 0 : index
    %11 = vector.load %arg3[%c0_10, %c0_11] : memref<5x32xf32, #tpu.memory_space<vmem>>, vector<5x32xf32>
    %cst_12 = arith.constant dense<0.000000e+00> : vector<16x32xf32>
    %12 = tpu.matmul %0, %11, %cst_12 {dimension_numbers = #tpu.dot_dimension_numbers<[1], [0], [0], [1], [0, 0, 1, 1], [], []>} : vector<16x5xf32>, vector<5x32xf32>, vector<16x32xf32> -> vector<16x32xf32>
    %c0_13 = arith.constant 0 : index
    %c0_14 = arith.constant 0 : index
    %13 = vector.load %arg9[%c0_13, %c0_14] : memref<1x32xf32, #tpu.memory_space<vmem>>, vector<1x32xf32>
    %14 = vector.broadcast %13 : vector<1x32xf32> to vector<16x32xf32>
    %15 = arith.addf %12, %14 : vector<16x32xf32>
    %c0_15 = arith.constant 0 : index
    %c0_16 = arith.constant 0 : index
    %16 = vector.load %arg4[%c0_15, %c0_16] : memref<32x32xf32, #tpu.memory_space<vmem>>, vector<32x32xf32>
    %c0_17 = arith.constant 0 : index
    %c0_18 = arith.constant 0 : index
    %17 = vector.load %arg5[%c0_17, %c0_18] : memref<32x32xf32, #tpu.memory_space<vmem>>, vector<32x32xf32>
    %c0_19 = arith.constant 0 : index
    %c0_20 = arith.constant 0 : index
    %18 = vector.load %arg6[%c0_19, %c0_20] : memref<32x32xf32, #tpu.memory_space<vmem>>, vector<32x32xf32>
    %c0_21 = arith.constant 0 : index
    %c0_22 = arith.constant 0 : index
    %19 = vector.load %arg10[%c0_21, %c0_22] : memref<1x32xf32, #tpu.memory_space<vmem>>, vector<1x32xf32>
    %cst_23 = arith.constant 0.000000e+00 : f32
    %20 = vector.broadcast %cst_23 : f32 to vector<2x32xf32>
    %cst_24 = arith.constant dense<0.000000e+00> : vector<2x32xf32>
    %21 = tpu.matmul %20, %16, %cst_24 {dimension_numbers = #tpu.dot_dimension_numbers<[1], [0], [0], [1], [0, 0, 1, 1], [], []>} : vector<2x32xf32>, vector<32x32xf32>, vector<2x32xf32> -> vector<2x32xf32>
    %cst_25 = arith.constant dense<0.000000e+00> : vector<2x32xf32>
    %22 = tpu.matmul %20, %17, %cst_25 {dimension_numbers = #tpu.dot_dimension_numbers<[1], [0], [0], [1], [0, 0, 1, 1], [], []>} : vector<2x32xf32>, vector<32x32xf32>, vector<2x32xf32> -> vector<2x32xf32>
    %cst_26 = arith.constant dense<0.000000e+00> : vector<2x32xf32>
    %23 = tpu.matmul %20, %18, %cst_26 {dimension_numbers = #tpu.dot_dimension_numbers<[1], [0], [0], [1], [0, 0, 1, 1], [], []>} : vector<2x32xf32>, vector<32x32xf32>, vector<2x32xf32> -> vector<2x32xf32>
    %24 = vector.broadcast %19 : vector<1x32xf32> to vector<2x32xf32>
    %25 = arith.addf %23, %24 : vector<2x32xf32>
    %26 = vector.extract_strided_slice %5 {offsets = [0, 0], sizes = [2, 32], strides = [1, 1]} : vector<16x32xf32> to vector<2x32xf32>
    %27 = arith.addf %26, %21 : vector<2x32xf32>
    %28 = arith.negf %27 : vector<2x32xf32>
    %29 = math.exp %28 : vector<2x32xf32>
    %cst_27 = arith.constant 1.000000e+00 : f32
    %30 = vector.broadcast %cst_27 : f32 to vector<2x32xf32>
    %31 = arith.addf %30, %29 : vector<2x32xf32>
    %32 = arith.divf %30, %31 : vector<2x32xf32>
    %33 = vector.extract_strided_slice %10 {offsets = [0, 0], sizes = [2, 32], strides = [1, 1]} : vector<16x32xf32> to vector<2x32xf32>
    %34 = arith.addf %33, %22 : vector<2x32xf32>
    %35 = arith.negf %34 : vector<2x32xf32>
    %36 = math.exp %35 : vector<2x32xf32>
    %cst_28 = arith.constant 1.000000e+00 : f32
    %37 = vector.broadcast %cst_28 : f32 to vector<2x32xf32>
    %38 = arith.addf %37, %36 : vector<2x32xf32>
    %39 = arith.divf %37, %38 : vector<2x32xf32>
    %40 = vector.extract_strided_slice %15 {offsets = [0, 0], sizes = [2, 32], strides = [1, 1]} : vector<16x32xf32> to vector<2x32xf32>
    %41 = arith.mulf %32, %25 : vector<2x32xf32>
    %42 = arith.addf %40, %41 : vector<2x32xf32>
    %43 = math.tanh %42 : vector<2x32xf32>
    %cst_29 = arith.constant 1.000000e+00 : f32
    %44 = vector.broadcast %cst_29 : f32 to vector<2x32xf32>
    %45 = arith.subf %44, %39 : vector<2x32xf32>
    %46 = arith.mulf %45, %43 : vector<2x32xf32>
    %47 = arith.mulf %39, %20 : vector<2x32xf32>
    %48 = arith.addf %46, %47 : vector<2x32xf32>
    %c0_30 = arith.constant 0 : index
    %c0_31 = arith.constant 0 : index
    %c0_32 = arith.constant 0 : index
    %49 = vector.load %arg20[%c0_30, %c0_31, %c0_32] : memref<2x8x32xf32, #tpu.memory_space<vmem>>, vector<2x1x32xf32>
    %50 = vector.shape_cast %49 : vector<2x1x32xf32> to vector<2x32xf32>
    %51 = vector.shape_cast %48 : vector<2x32xf32> to vector<2x1x32xf32>
    tpu.vector_store %arg20[%c0_30, %c0_31, %c0_32], %51 {strides = array<i32>} : memref<2x8x32xf32, #tpu.memory_space<vmem>>, vector<2x1x32xf32>,
    %cst_33 = arith.constant dense<0.000000e+00> : vector<2x32xf32>
    %52 = tpu.matmul %48, %16, %cst_33 {dimension_numbers = #tpu.dot_dimension_numbers<[1], [0], [0], [1], [0, 0, 1, 1], [], []>} : vector<2x32xf32>, vector<32x32xf32>, vector<2x32xf32> -> vector<2x32xf32>
    %cst_34 = arith.constant dense<0.000000e+00> : vector<2x32xf32>
    %53 = tpu.matmul %48, %17, %cst_34 {dimension_numbers = #tpu.dot_dimension_numbers<[1], [0], [0], [1], [0, 0, 1, 1], [], []>} : vector<2x32xf32>, vector<32x32xf32>, vector<2x32xf32> -> vector<2x32xf32>
    %cst_35 = arith.constant dense<0.000000e+00> : vector<2x32xf32>
    %54 = tpu.matmul %48, %18, %cst_35 {dimension_numbers = #tpu.dot_dimension_numbers<[1], [0], [0], [1], [0, 0, 1, 1], [], []>} : vector<2x32xf32>, vector<32x32xf32>, vector<2x32xf32> -> vector<2x32xf32>
    %55 = vector.broadcast %19 : vector<1x32xf32> to vector<2x32xf32>
    %56 = arith.addf %54, %55 : vector<2x32xf32>
    %57 = vector.extract_strided_slice %5 {offsets = [2, 0], sizes = [2, 32], strides = [1, 1]} : vector<16x32xf32> to vector<2x32xf32>
    %58 = arith.addf %57, %52 : vector<2x32xf32>
    %59 = arith.negf %58 : vector<2x32xf32>
    %60 = math.exp %59 : vector<2x32xf32>
    %cst_36 = arith.constant 1.000000e+00 : f32
    %61 = vector.broadcast %cst_36 : f32 to vector<2x32xf32>
    %62 = arith.addf %61, %60 : vector<2x32xf32>
    %63 = arith.divf %61, %62 : vector<2x32xf32>
    %64 = vector.extract_strided_slice %10 {offsets = [2, 0], sizes = [2, 32], strides = [1, 1]} : vector<16x32xf32> to vector<2x32xf32>
    %65 = arith.addf %64, %53 : vector<2x32xf32>
    %66 = arith.negf %65 : vector<2x32xf32>
    %67 = math.exp %66 : vector<2x32xf32>
    %cst_37 = arith.constant 1.000000e+00 : f32
    %68 = vector.broadcast %cst_37 : f32 to vector<2x32xf32>
    %69 = arith.addf %68, %67 : vector<2x32xf32>
    %70 = arith.divf %68, %69 : vector<2x32xf32>
    %71 = vector.extract_strided_slice %15 {offsets = [2, 0], sizes = [2, 32], strides = [1, 1]} : vector<16x32xf32> to vector<2x32xf32>
    %72 = arith.mulf %63, %56 : vector<2x32xf32>
    %73 = arith.addf %71, %72 : vector<2x32xf32>
    %74 = math.tanh %73 : vector<2x32xf32>
    %cst_38 = arith.constant 1.000000e+00 : f32
    %75 = vector.broadcast %cst_38 : f32 to vector<2x32xf32>
    %76 = arith.subf %75, %70 : vector<2x32xf32>
    %77 = arith.mulf %76, %74 : vector<2x32xf32>
    %78 = arith.mulf %70, %48 : vector<2x32xf32>
    %79 = arith.addf %77, %78 : vector<2x32xf32>
    %c0_39 = arith.constant 0 : index
    %c1 = arith.constant 1 : index
    %c0_40 = arith.constant 0 : index
    %80 = vector.load %arg20[%c0_39, %c1, %c0_40] : memref<2x8x32xf32, #tpu.memory_space<vmem>>, vector<2x1x32xf32>
    %81 = vector.shape_cast %80 : vector<2x1x32xf32> to vector<2x32xf32>
    %82 = vector.shape_cast %79 : vector<2x32xf32> to vector<2x1x32xf32>
    tpu.vector_store %arg20[%c0_39, %c1, %c0_40], %82 {strides = array<i32>} : memref<2x8x32xf32, #tpu.memory_space<vmem>>, vector<2x1x32xf32>,
    %cst_41 = arith.constant dense<0.000000e+00> : vector<2x32xf32>
    %83 = tpu.matmul %79, %16, %cst_41 {dimension_numbers = #tpu.dot_dimension_numbers<[1], [0], [0], [1], [0, 0, 1, 1], [], []>} : vector<2x32xf32>, vector<32x32xf32>, vector<2x32xf32> -> vector<2x32xf32>
    %cst_42 = arith.constant dense<0.000000e+00> : vector<2x32xf32>
    %84 = tpu.matmul %79, %17, %cst_42 {dimension_numbers = #tpu.dot_dimension_numbers<[1], [0], [0], [1], [0, 0, 1, 1], [], []>} : vector<2x32xf32>, vector<32x32xf32>, vector<2x32xf32> -> vector<2x32xf32>
    %cst_43 = arith.constant dense<0.000000e+00> : vector<2x32xf32>
    %85 = tpu.matmul %79, %18, %cst_43 {dimension_numbers = #tpu.dot_dimension_numbers<[1], [0], [0], [1], [0, 0, 1, 1], [], []>} : vector<2x32xf32>, vector<32x32xf32>, vector<2x32xf32> -> vector<2x32xf32>
    %86 = vector.broadcast %19 : vector<1x32xf32> to vector<2x32xf32>
    %87 = arith.addf %85, %86 : vector<2x32xf32>
    %88 = vector.extract_strided_slice %5 {offsets = [4, 0], sizes = [2, 32], strides = [1, 1]} : vector<16x32xf32> to vector<2x32xf32>
    %89 = arith.addf %88, %83 : vector<2x32xf32>
    %90 = arith.negf %89 : vector<2x32xf32>
    %91 = math.exp %90 : vector<2x32xf32>
    %cst_44 = arith.constant 1.000000e+00 : f32
    %92 = vector.broadcast %cst_44 : f32 to vector<2x32xf32>
    %93 = arith.addf %92, %91 : vector<2x32xf32>
    %94 = arith.divf %92, %93 : vector<2x32xf32>
    %95 = vector.extract_strided_slice %10 {offsets = [4, 0], sizes = [2, 32], strides = [1, 1]} : vector<16x32xf32> to vector<2x32xf32>
    %96 = arith.addf %95, %84 : vector<2x32xf32>
    %97 = arith.negf %96 : vector<2x32xf32>
    %98 = math.exp %97 : vector<2x32xf32>
    %cst_45 = arith.constant 1.000000e+00 : f32
    %99 = vector.broadcast %cst_45 : f32 to vector<2x32xf32>
    %100 = arith.addf %99, %98 : vector<2x32xf32>
    %101 = arith.divf %99, %100 : vector<2x32xf32>
    %102 = vector.extract_strided_slice %15 {offsets = [4, 0], sizes = [2, 32], strides = [1, 1]} : vector<16x32xf32> to vector<2x32xf32>
    %103 = arith.mulf %94, %87 : vector<2x32xf32>
    %104 = arith.addf %102, %103 : vector<2x32xf32>
    %105 = math.tanh %104 : vector<2x32xf32>
    %cst_46 = arith.constant 1.000000e+00 : f32
    %106 = vector.broadcast %cst_46 : f32 to vector<2x32xf32>
    %107 = arith.subf %106, %101 : vector<2x32xf32>
    %108 = arith.mulf %107, %105 : vector<2x32xf32>
    %109 = arith.mulf %101, %79 : vector<2x32xf32>
    %110 = arith.addf %108, %109 : vector<2x32xf32>
    %c0_47 = arith.constant 0 : index
    %c2 = arith.constant 2 : index
    %c0_48 = arith.constant 0 : index
    %111 = vector.load %arg20[%c0_47, %c2, %c0_48] : memref<2x8x32xf32, #tpu.memory_space<vmem>>, vector<2x1x32xf32>
    %112 = vector.shape_cast %111 : vector<2x1x32xf32> to vector<2x32xf32>
    %113 = vector.shape_cast %110 : vector<2x32xf32> to vector<2x1x32xf32>
    tpu.vector_store %arg20[%c0_47, %c2, %c0_48], %113 {strides = array<i32>} : memref<2x8x32xf32, #tpu.memory_space<vmem>>, vector<2x1x32xf32>,
    %cst_49 = arith.constant dense<0.000000e+00> : vector<2x32xf32>
    %114 = tpu.matmul %110, %16, %cst_49 {dimension_numbers = #tpu.dot_dimension_numbers<[1], [0], [0], [1], [0, 0, 1, 1], [], []>} : vector<2x32xf32>, vector<32x32xf32>, vector<2x32xf32> -> vector<2x32xf32>
    %cst_50 = arith.constant dense<0.000000e+00> : vector<2x32xf32>
    %115 = tpu.matmul %110, %17, %cst_50 {dimension_numbers = #tpu.dot_dimension_numbers<[1], [0], [0], [1], [0, 0, 1, 1], [], []>} : vector<2x32xf32>, vector<32x32xf32>, vector<2x32xf32> -> vector<2x32xf32>
    %cst_51 = arith.constant dense<0.000000e+00> : vector<2x32xf32>
    %116 = tpu.matmul %110, %18, %cst_51 {dimension_numbers = #tpu.dot_dimension_numbers<[1], [0], [0], [1], [0, 0, 1, 1], [], []>} : vector<2x32xf32>, vector<32x32xf32>, vector<2x32xf32> -> vector<2x32xf32>
    %117 = vector.broadcast %19 : vector<1x32xf32> to vector<2x32xf32>
    %118 = arith.addf %116, %117 : vector<2x32xf32>
    %119 = vector.extract_strided_slice %5 {offsets = [6, 0], sizes = [2, 32], strides = [1, 1]} : vector<16x32xf32> to vector<2x32xf32>
    %120 = arith.addf %119, %114 : vector<2x32xf32>
    %121 = arith.negf %120 : vector<2x32xf32>
    %122 = math.exp %121 : vector<2x32xf32>
    %cst_52 = arith.constant 1.000000e+00 : f32
    %123 = vector.broadcast %cst_52 : f32 to vector<2x32xf32>
    %124 = arith.addf %123, %122 : vector<2x32xf32>
    %125 = arith.divf %123, %124 : vector<2x32xf32>
    %126 = vector.extract_strided_slice %10 {offsets = [6, 0], sizes = [2, 32], strides = [1, 1]} : vector<16x32xf32> to vector<2x32xf32>
    %127 = arith.addf %126, %115 : vector<2x32xf32>
    %128 = arith.negf %127 : vector<2x32xf32>
    %129 = math.exp %128 : vector<2x32xf32>
    %cst_53 = arith.constant 1.000000e+00 : f32
    %130 = vector.broadcast %cst_53 : f32 to vector<2x32xf32>
    %131 = arith.addf %130, %129 : vector<2x32xf32>
    %132 = arith.divf %130, %131 : vector<2x32xf32>
    %133 = vector.extract_strided_slice %15 {offsets = [6, 0], sizes = [2, 32], strides = [1, 1]} : vector<16x32xf32> to vector<2x32xf32>
    %134 = arith.mulf %125, %118 : vector<2x32xf32>
    %135 = arith.addf %133, %134 : vector<2x32xf32>
    %136 = math.tanh %135 : vector<2x32xf32>
    %cst_54 = arith.constant 1.000000e+00 : f32
    %137 = vector.broadcast %cst_54 : f32 to vector<2x32xf32>
    %138 = arith.subf %137, %132 : vector<2x32xf32>
    %139 = arith.mulf %138, %136 : vector<2x32xf32>
    %140 = arith.mulf %132, %110 : vector<2x32xf32>
    %141 = arith.addf %139, %140 : vector<2x32xf32>
    %c0_55 = arith.constant 0 : index
    %c3 = arith.constant 3 : index
    %c0_56 = arith.constant 0 : index
    %142 = vector.load %arg20[%c0_55, %c3, %c0_56] : memref<2x8x32xf32, #tpu.memory_space<vmem>>, vector<2x1x32xf32>
    %143 = vector.shape_cast %142 : vector<2x1x32xf32> to vector<2x32xf32>
    %144 = vector.shape_cast %141 : vector<2x32xf32> to vector<2x1x32xf32>
    tpu.vector_store %arg20[%c0_55, %c3, %c0_56], %144 {strides = array<i32>} : memref<2x8x32xf32, #tpu.memory_space<vmem>>, vector<2x1x32xf32>,
    %cst_57 = arith.constant dense<0.000000e+00> : vector<2x32xf32>
    %145 = tpu.matmul %141, %16, %cst_57 {dimension_numbers = #tpu.dot_dimension_numbers<[1], [0], [0], [1], [0, 0, 1, 1], [], []>} : vector<2x32xf32>, vector<32x32xf32>, vector<2x32xf32> -> vector<2x32xf32>
    %cst_58 = arith.constant dense<0.000000e+00> : vector<2x32xf32>
    %146 = tpu.matmul %141, %17, %cst_58 {dimension_numbers = #tpu.dot_dimension_numbers<[1], [0], [0], [1], [0, 0, 1, 1], [], []>} : vector<2x32xf32>, vector<32x32xf32>, vector<2x32xf32> -> vector<2x32xf32>
    %cst_59 = arith.constant dense<0.000000e+00> : vector<2x32xf32>
    %147 = tpu.matmul %141, %18, %cst_59 {dimension_numbers = #tpu.dot_dimension_numbers<[1], [0], [0], [1], [0, 0, 1, 1], [], []>} : vector<2x32xf32>, vector<32x32xf32>, vector<2x32xf32> -> vector<2x32xf32>
    %148 = vector.broadcast %19 : vector<1x32xf32> to vector<2x32xf32>
    %149 = arith.addf %147, %148 : vector<2x32xf32>
    %150 = vector.extract_strided_slice %5 {offsets = [8, 0], sizes = [2, 32], strides = [1, 1]} : vector<16x32xf32> to vector<2x32xf32>
    %151 = arith.addf %150, %145 : vector<2x32xf32>
    %152 = arith.negf %151 : vector<2x32xf32>
    %153 = math.exp %152 : vector<2x32xf32>
    %cst_60 = arith.constant 1.000000e+00 : f32
    %154 = vector.broadcast %cst_60 : f32 to vector<2x32xf32>
    %155 = arith.addf %154, %153 : vector<2x32xf32>
    %156 = arith.divf %154, %155 : vector<2x32xf32>
    %157 = vector.extract_strided_slice %10 {offsets = [8, 0], sizes = [2, 32], strides = [1, 1]} : vector<16x32xf32> to vector<2x32xf32>
    %158 = arith.addf %157, %146 : vector<2x32xf32>
    %159 = arith.negf %158 : vector<2x32xf32>
    %160 = math.exp %159 : vector<2x32xf32>
    %cst_61 = arith.constant 1.000000e+00 : f32
    %161 = vector.broadcast %cst_61 : f32 to vector<2x32xf32>
    %162 = arith.addf %161, %160 : vector<2x32xf32>
    %163 = arith.divf %161, %162 : vector<2x32xf32>
    %164 = vector.extract_strided_slice %15 {offsets = [8, 0], sizes = [2, 32], strides = [1, 1]} : vector<16x32xf32> to vector<2x32xf32>
    %165 = arith.mulf %156, %149 : vector<2x32xf32>
    %166 = arith.addf %164, %165 : vector<2x32xf32>
    %167 = math.tanh %166 : vector<2x32xf32>
    %cst_62 = arith.constant 1.000000e+00 : f32
    %168 = vector.broadcast %cst_62 : f32 to vector<2x32xf32>
    %169 = arith.subf %168, %163 : vector<2x32xf32>
    %170 = arith.mulf %169, %167 : vector<2x32xf32>
    %171 = arith.mulf %163, %141 : vector<2x32xf32>
    %172 = arith.addf %170, %171 : vector<2x32xf32>
    %c0_63 = arith.constant 0 : index
    %c4 = arith.constant 4 : index
    %c0_64 = arith.constant 0 : index
    %173 = vector.load %arg20[%c0_63, %c4, %c0_64] : memref<2x8x32xf32, #tpu.memory_space<vmem>>, vector<2x1x32xf32>
    %174 = vector.shape_cast %173 : vector<2x1x32xf32> to vector<2x32xf32>
    %175 = vector.shape_cast %172 : vector<2x32xf32> to vector<2x1x32xf32>
    tpu.vector_store %arg20[%c0_63, %c4, %c0_64], %175 {strides = array<i32>} : memref<2x8x32xf32, #tpu.memory_space<vmem>>, vector<2x1x32xf32>,
    %cst_65 = arith.constant dense<0.000000e+00> : vector<2x32xf32>
    %176 = tpu.matmul %172, %16, %cst_65 {dimension_numbers = #tpu.dot_dimension_numbers<[1], [0], [0], [1], [0, 0, 1, 1], [], []>} : vector<2x32xf32>, vector<32x32xf32>, vector<2x32xf32> -> vector<2x32xf32>
    %cst_66 = arith.constant dense<0.000000e+00> : vector<2x32xf32>
    %177 = tpu.matmul %172, %17, %cst_66 {dimension_numbers = #tpu.dot_dimension_numbers<[1], [0], [0], [1], [0, 0, 1, 1], [], []>} : vector<2x32xf32>, vector<32x32xf32>, vector<2x32xf32> -> vector<2x32xf32>
    %cst_67 = arith.constant dense<0.000000e+00> : vector<2x32xf32>
    %178 = tpu.matmul %172, %18, %cst_67 {dimension_numbers = #tpu.dot_dimension_numbers<[1], [0], [0], [1], [0, 0, 1, 1], [], []>} : vector<2x32xf32>, vector<32x32xf32>, vector<2x32xf32> -> vector<2x32xf32>
    %179 = vector.broadcast %19 : vector<1x32xf32> to vector<2x32xf32>
    %180 = arith.addf %178, %179 : vector<2x32xf32>
    %181 = vector.extract_strided_slice %5 {offsets = [10, 0], sizes = [2, 32], strides = [1, 1]} : vector<16x32xf32> to vector<2x32xf32>
    %182 = arith.addf %181, %176 : vector<2x32xf32>
    %183 = arith.negf %182 : vector<2x32xf32>
    %184 = math.exp %183 : vector<2x32xf32>
    %cst_68 = arith.constant 1.000000e+00 : f32
    %185 = vector.broadcast %cst_68 : f32 to vector<2x32xf32>
    %186 = arith.addf %185, %184 : vector<2x32xf32>
    %187 = arith.divf %185, %186 : vector<2x32xf32>
    %188 = vector.extract_strided_slice %10 {offsets = [10, 0], sizes = [2, 32], strides = [1, 1]} : vector<16x32xf32> to vector<2x32xf32>
    %189 = arith.addf %188, %177 : vector<2x32xf32>
    %190 = arith.negf %189 : vector<2x32xf32>
    %191 = math.exp %190 : vector<2x32xf32>
    %cst_69 = arith.constant 1.000000e+00 : f32
    %192 = vector.broadcast %cst_69 : f32 to vector<2x32xf32>
    %193 = arith.addf %192, %191 : vector<2x32xf32>
    %194 = arith.divf %192, %193 : vector<2x32xf32>
    %195 = vector.extract_strided_slice %15 {offsets = [10, 0], sizes = [2, 32], strides = [1, 1]} : vector<16x32xf32> to vector<2x32xf32>
    %196 = arith.mulf %187, %180 : vector<2x32xf32>
    %197 = arith.addf %195, %196 : vector<2x32xf32>
    %198 = math.tanh %197 : vector<2x32xf32>
    %cst_70 = arith.constant 1.000000e+00 : f32
    %199 = vector.broadcast %cst_70 : f32 to vector<2x32xf32>
    %200 = arith.subf %199, %194 : vector<2x32xf32>
    %201 = arith.mulf %200, %198 : vector<2x32xf32>
    %202 = arith.mulf %194, %172 : vector<2x32xf32>
    %203 = arith.addf %201, %202 : vector<2x32xf32>
    %c0_71 = arith.constant 0 : index
    %c5 = arith.constant 5 : index
    %c0_72 = arith.constant 0 : index
    %204 = vector.load %arg20[%c0_71, %c5, %c0_72] : memref<2x8x32xf32, #tpu.memory_space<vmem>>, vector<2x1x32xf32>
    %205 = vector.shape_cast %204 : vector<2x1x32xf32> to vector<2x32xf32>
    %206 = vector.shape_cast %203 : vector<2x32xf32> to vector<2x1x32xf32>
    tpu.vector_store %arg20[%c0_71, %c5, %c0_72], %206 {strides = array<i32>} : memref<2x8x32xf32, #tpu.memory_space<vmem>>, vector<2x1x32xf32>,
    %cst_73 = arith.constant dense<0.000000e+00> : vector<2x32xf32>
    %207 = tpu.matmul %203, %16, %cst_73 {dimension_numbers = #tpu.dot_dimension_numbers<[1], [0], [0], [1], [0, 0, 1, 1], [], []>} : vector<2x32xf32>, vector<32x32xf32>, vector<2x32xf32> -> vector<2x32xf32>
    %cst_74 = arith.constant dense<0.000000e+00> : vector<2x32xf32>
    %208 = tpu.matmul %203, %17, %cst_74 {dimension_numbers = #tpu.dot_dimension_numbers<[1], [0], [0], [1], [0, 0, 1, 1], [], []>} : vector<2x32xf32>, vector<32x32xf32>, vector<2x32xf32> -> vector<2x32xf32>
    %cst_75 = arith.constant dense<0.000000e+00> : vector<2x32xf32>
    %209 = tpu.matmul %203, %18, %cst_75 {dimension_numbers = #tpu.dot_dimension_numbers<[1], [0], [0], [1], [0, 0, 1, 1], [], []>} : vector<2x32xf32>, vector<32x32xf32>, vector<2x32xf32> -> vector<2x32xf32>
    %210 = vector.broadcast %19 : vector<1x32xf32> to vector<2x32xf32>
    %211 = arith.addf %209, %210 : vector<2x32xf32>
    %212 = vector.extract_strided_slice %5 {offsets = [12, 0], sizes = [2, 32], strides = [1, 1]} : vector<16x32xf32> to vector<2x32xf32>
    %213 = arith.addf %212, %207 : vector<2x32xf32>
    %214 = arith.negf %213 : vector<2x32xf32>
    %215 = math.exp %214 : vector<2x32xf32>
    %cst_76 = arith.constant 1.000000e+00 : f32
    %216 = vector.broadcast %cst_76 : f32 to vector<2x32xf32>
    %217 = arith.addf %216, %215 : vector<2x32xf32>
    %218 = arith.divf %216, %217 : vector<2x32xf32>
    %219 = vector.extract_strided_slice %10 {offsets = [12, 0], sizes = [2, 32], strides = [1, 1]} : vector<16x32xf32> to vector<2x32xf32>
    %220 = arith.addf %219, %208 : vector<2x32xf32>
    %221 = arith.negf %220 : vector<2x32xf32>
    %222 = math.exp %221 : vector<2x32xf32>
    %cst_77 = arith.constant 1.000000e+00 : f32
    %223 = vector.broadcast %cst_77 : f32 to vector<2x32xf32>
    %224 = arith.addf %223, %222 : vector<2x32xf32>
    %225 = arith.divf %223, %224 : vector<2x32xf32>
    %226 = vector.extract_strided_slice %15 {offsets = [12, 0], sizes = [2, 32], strides = [1, 1]} : vector<16x32xf32> to vector<2x32xf32>
    %227 = arith.mulf %218, %211 : vector<2x32xf32>
    %228 = arith.addf %226, %227 : vector<2x32xf32>
    %229 = math.tanh %228 : vector<2x32xf32>
    %cst_78 = arith.constant 1.000000e+00 : f32
    %230 = vector.broadcast %cst_78 : f32 to vector<2x32xf32>
    %231 = arith.subf %230, %225 : vector<2x32xf32>
    %232 = arith.mulf %231, %229 : vector<2x32xf32>
    %233 = arith.mulf %225, %203 : vector<2x32xf32>
    %234 = arith.addf %232, %233 : vector<2x32xf32>
    %c0_79 = arith.constant 0 : index
    %c6 = arith.constant 6 : index
    %c0_80 = arith.constant 0 : index
    %235 = vector.load %arg20[%c0_79, %c6, %c0_80] : memref<2x8x32xf32, #tpu.memory_space<vmem>>, vector<2x1x32xf32>
    %236 = vector.shape_cast %235 : vector<2x1x32xf32> to vector<2x32xf32>
    %237 = vector.shape_cast %234 : vector<2x32xf32> to vector<2x1x32xf32>
    tpu.vector_store %arg20[%c0_79, %c6, %c0_80], %237 {strides = array<i32>} : memref<2x8x32xf32, #tpu.memory_space<vmem>>, vector<2x1x32xf32>,
    %cst_81 = arith.constant dense<0.000000e+00> : vector<2x32xf32>
    %238 = tpu.matmul %234, %16, %cst_81 {dimension_numbers = #tpu.dot_dimension_numbers<[1], [0], [0], [1], [0, 0, 1, 1], [], []>} : vector<2x32xf32>, vector<32x32xf32>, vector<2x32xf32> -> vector<2x32xf32>
    %cst_82 = arith.constant dense<0.000000e+00> : vector<2x32xf32>
    %239 = tpu.matmul %234, %17, %cst_82 {dimension_numbers = #tpu.dot_dimension_numbers<[1], [0], [0], [1], [0, 0, 1, 1], [], []>} : vector<2x32xf32>, vector<32x32xf32>, vector<2x32xf32> -> vector<2x32xf32>
    %cst_83 = arith.constant dense<0.000000e+00> : vector<2x32xf32>
    %240 = tpu.matmul %234, %18, %cst_83 {dimension_numbers = #tpu.dot_dimension_numbers<[1], [0], [0], [1], [0, 0, 1, 1], [], []>} : vector<2x32xf32>, vector<32x32xf32>, vector<2x32xf32> -> vector<2x32xf32>
    %241 = vector.broadcast %19 : vector<1x32xf32> to vector<2x32xf32>
    %242 = arith.addf %240, %241 : vector<2x32xf32>
    %243 = vector.extract_strided_slice %5 {offsets = [14, 0], sizes = [2, 32], strides = [1, 1]} : vector<16x32xf32> to vector<2x32xf32>
    %244 = arith.addf %243, %238 : vector<2x32xf32>
    %245 = arith.negf %244 : vector<2x32xf32>
    %246 = math.exp %245 : vector<2x32xf32>
    %cst_84 = arith.constant 1.000000e+00 : f32
    %247 = vector.broadcast %cst_84 : f32 to vector<2x32xf32>
    %248 = arith.addf %247, %246 : vector<2x32xf32>
    %249 = arith.divf %247, %248 : vector<2x32xf32>
    %250 = vector.extract_strided_slice %10 {offsets = [14, 0], sizes = [2, 32], strides = [1, 1]} : vector<16x32xf32> to vector<2x32xf32>
    %251 = arith.addf %250, %239 : vector<2x32xf32>
    %252 = arith.negf %251 : vector<2x32xf32>
    %253 = math.exp %252 : vector<2x32xf32>
    %cst_85 = arith.constant 1.000000e+00 : f32
    %254 = vector.broadcast %cst_85 : f32 to vector<2x32xf32>
    %255 = arith.addf %254, %253 : vector<2x32xf32>
    %256 = arith.divf %254, %255 : vector<2x32xf32>
    %257 = vector.extract_strided_slice %15 {offsets = [14, 0], sizes = [2, 32], strides = [1, 1]} : vector<16x32xf32> to vector<2x32xf32>
    %258 = arith.mulf %249, %242 : vector<2x32xf32>
    %259 = arith.addf %257, %258 : vector<2x32xf32>
    %260 = math.tanh %259 : vector<2x32xf32>
    %cst_86 = arith.constant 1.000000e+00 : f32
    %261 = vector.broadcast %cst_86 : f32 to vector<2x32xf32>
    %262 = arith.subf %261, %256 : vector<2x32xf32>
    %263 = arith.mulf %262, %260 : vector<2x32xf32>
    %264 = arith.mulf %256, %234 : vector<2x32xf32>
    %265 = arith.addf %263, %264 : vector<2x32xf32>
    %c0_87 = arith.constant 0 : index
    %c7 = arith.constant 7 : index
    %c0_88 = arith.constant 0 : index
    %266 = vector.load %arg20[%c0_87, %c7, %c0_88] : memref<2x8x32xf32, #tpu.memory_space<vmem>>, vector<2x1x32xf32>
    %267 = vector.shape_cast %266 : vector<2x1x32xf32> to vector<2x32xf32>
    %268 = vector.shape_cast %265 : vector<2x32xf32> to vector<2x1x32xf32>
    tpu.vector_store %arg20[%c0_87, %c7, %c0_88], %268 {strides = array<i32>} : memref<2x8x32xf32, #tpu.memory_space<vmem>>, vector<2x1x32xf32>,
    %c0_89 = arith.constant 0 : index
    %c0_90 = arith.constant 0 : index
    %c0_91 = arith.constant 0 : index
    %269 = vector.load %arg20[%c0_89, %c0_90, %c0_91] : memref<2x8x32xf32, #tpu.memory_space<vmem>>, vector<2x8x32xf32>
    %c0_92 = arith.constant 0 : index
    %c0_93 = arith.constant 0 : index
    %270 = vector.load %arg11[%c0_92, %c0_93] : memref<32x32xf32, #tpu.memory_space<vmem>>, vector<32x32xf32>
    "tpu.trace_start"() <{level = 10 : i32, message = "bsh,hk->bsk"}> : () -> ()
    %cst_94 = arith.constant dense<0.000000e+00> : vector<2x8x32xf32>
    %271 = tpu.matmul %269, %270, %cst_94 {dimension_numbers = #tpu.dot_dimension_numbers<[2], [0], [0, 1], [1], [0, 0, 0, 1, 1, 1], [], []>} : vector<2x8x32xf32>, vector<32x32xf32>, vector<2x8x32xf32> -> vector<2x8x32xf32>
    "tpu.trace_stop"() : () -> ()
    %c0_95 = arith.constant 0 : index
    %c0_96 = arith.constant 0 : index
    %272 = vector.load %arg14[%c0_95, %c0_96] : memref<1x32xf32, #tpu.memory_space<vmem>>, vector<1x32xf32>
    %273 = vector.shape_cast %272 : vector<1x32xf32> to vector<1x1x32xf32>
    %274 = vector.broadcast %273 : vector<1x1x32xf32> to vector<2x8x32xf32>
    %275 = arith.addf %271, %274 : vector<2x8x32xf32>
    %c0_97 = arith.constant 0 : index
    %c0_98 = arith.constant 0 : index
    %276 = vector.load %arg12[%c0_97, %c0_98] : memref<32x32xf32, #tpu.memory_space<vmem>>, vector<32x32xf32>
    "tpu.trace_start"() <{level = 10 : i32, message = "bsh,hk->bsk"}> : () -> ()
    %cst_99 = arith.constant dense<0.000000e+00> : vector<2x8x32xf32>
    %277 = tpu.matmul %269, %276, %cst_99 {dimension_numbers = #tpu.dot_dimension_numbers<[2], [0], [0, 1], [1], [0, 0, 0, 1, 1, 1], [], []>} : vector<2x8x32xf32>, vector<32x32xf32>, vector<2x8x32xf32> -> vector<2x8x32xf32>
    "tpu.trace_stop"() : () -> ()
    %c0_100 = arith.constant 0 : index
    %c0_101 = arith.constant 0 : index
    %278 = vector.load %arg15[%c0_100, %c0_101] : memref<1x32xf32, #tpu.memory_space<vmem>>, vector<1x32xf32>
    %279 = vector.shape_cast %278 : vector<1x32xf32> to vector<1x1x32xf32>
    %280 = vector.broadcast %279 : vector<1x1x32xf32> to vector<2x8x32xf32>
    %281 = arith.addf %277, %280 : vector<2x8x32xf32>
    %c0_102 = arith.constant 0 : index
    %c0_103 = arith.constant 0 : index
    %282 = vector.load %arg13[%c0_102, %c0_103] : memref<32x32xf32, #tpu.memory_space<vmem>>, vector<32x32xf32>
    "tpu.trace_start"() <{level = 10 : i32, message = "bsh,hk->bsk"}> : () -> ()
    %cst_104 = arith.constant dense<0.000000e+00> : vector<2x8x32xf32>
    %283 = tpu.matmul %269, %282, %cst_104 {dimension_numbers = #tpu.dot_dimension_numbers<[2], [0], [0, 1], [1], [0, 0, 0, 1, 1, 1], [], []>} : vector<2x8x32xf32>, vector<32x32xf32>, vector<2x8x32xf32> -> vector<2x8x32xf32>
    "tpu.trace_stop"() : () -> ()
    %c0_105 = arith.constant 0 : index
    %c0_106 = arith.constant 0 : index
    %284 = vector.load %arg16[%c0_105, %c0_106] : memref<1x32xf32, #tpu.memory_space<vmem>>, vector<1x32xf32>
    %285 = vector.shape_cast %284 : vector<1x32xf32> to vector<1x1x32xf32>
    %286 = vector.broadcast %285 : vector<1x1x32xf32> to vector<2x8x32xf32>
    %287 = arith.addf %283, %286 : vector<2x8x32xf32>
    "tpu.trace_start"() <{level = 10 : i32, message = "bqh,bkh->bqk"}> : () -> ()
    %cst_107 = arith.constant dense<0.000000e+00> : vector<2x8x8xf32>
    %288 = tpu.matmul %275, %281, %cst_107 {dimension_numbers = #tpu.dot_dimension_numbers<[2], [2], [1], [1], [0, 0, 0, 1, 1, 1], [0], [0]>} : vector<2x8x32xf32>, vector<2x8x32xf32>, vector<2x8x8xf32> -> vector<2x8x8xf32>
    "tpu.trace_stop"() : () -> ()
    %cst_108 = arith.constant 0.176776692 : f32
    %289 = vector.broadcast %cst_108 : f32 to vector<2x8x8xf32>
    %290 = arith.mulf %288, %289 : vector<2x8x8xf32>
    %cst_109 = arith.constant dense<0xFF800000> : vector<2x8xf32>
    %291 = vector.multi_reduction <maximumf>, %290, %cst_109 [2] : vector<2x8x8xf32> to vector<2x8xf32>
    %292 = vector.shape_cast %291 : vector<2x8xf32> to vector<2x8x1xf32>
    %293 = vector.broadcast %292 : vector<2x8x1xf32> to vector<2x8x8xf32>
    %294 = arith.subf %290, %293 : vector<2x8x8xf32>
    %295 = math.exp %294 : vector<2x8x8xf32>
    %cst_110 = arith.constant dense<0.000000e+00> : vector<2x8xf32>
    %296 = vector.multi_reduction <add>, %295, %cst_110 [2] : vector<2x8x8xf32> to vector<2x8xf32>
    %297 = vector.shape_cast %296 : vector<2x8xf32> to vector<2x8x1xf32>
    %298 = tpu.reciprocal %297 {approx = true} : vector<2x8x1xf32> -> vector<2x8x1xf32>
    %299 = vector.broadcast %298 : vector<2x8x1xf32> to vector<2x8x8xf32>
    %300 = arith.mulf %295, %299 : vector<2x8x8xf32>
    "tpu.trace_start"() <{level = 10 : i32, message = "bqk,bkh->bqh"}> : () -> ()
    %cst_111 = arith.constant dense<0.000000e+00> : vector<2x8x32xf32>
    %301 = tpu.matmul %300, %287, %cst_111 {dimension_numbers = #tpu.dot_dimension_numbers<[2], [1], [1], [2], [0, 0, 0, 1, 1, 2], [0], [0]>} : vector<2x8x8xf32>, vector<2x8x32xf32>, vector<2x8x32xf32> -> vector<2x8x32xf32>
    "tpu.trace_stop"() : () -> ()
    %cst_112 = arith.constant dense<0.000000e+00> : vector<2x32xf32>
    %302 = vector.multi_reduction <add>, %301, %cst_112 [1] : vector<2x8x32xf32> to vector<2x32xf32>
    %c0_113 = arith.constant 0 : index
    %c0_114 = arith.constant 0 : index
    %303 = vector.load %arg17[%c0_113, %c0_114] : memref<32x16xf32, #tpu.memory_space<vmem>>, vector<32x16xf32>
    %cst_115 = arith.constant dense<0.000000e+00> : vector<2x16xf32>
    %304 = tpu.matmul %302, %303, %cst_115 {dimension_numbers = #tpu.dot_dimension_numbers<[1], [0], [0], [1], [0, 0, 1, 1], [], []>} : vector<2x32xf32>, vector<32x16xf32>, vector<2x16xf32> -> vector<2x16xf32>
    %c0_116 = arith.constant 0 : index
    %c0_117 = arith.constant 0 : index
    %305 = vector.load %arg18[%c0_116, %c0_117] : memref<1x16xf32, #tpu.memory_space<vmem>>, vector<1x16xf32>
    %306 = vector.broadcast %305 : vector<1x16xf32> to vector<2x16xf32>
    %307 = arith.addf %304, %306 : vector<2x16xf32>
    %308 = math.tanh %307 : vector<2x16xf32>
    %c0_118 = arith.constant 0 : index
    %c0_119 = arith.constant 0 : index
    %309 = vector.load %arg19[%c0_118, %c0_119] : memref<2x16xf32, #tpu.memory_space<vmem>>, vector<2x16xf32>
    tpu.vector_store %arg19[%c0_118, %c0_119], %308 {strides = array<i32>} : memref<2x16xf32, #tpu.memory_space<vmem>>, vector<2x16xf32>,
    return
  }
}

</mosaic_0001>

<bundles_post_ra>
// kernel: embed_atten_seq_forward.1
= control target key start
LH: loop header
LB: loop body
LE: loop exit
PB: predicated region body
PF: predicated region fallthrough
CT: control target
= control target key end

     0   :  { %s5166_s0 = inlined_call_operand.vmem [shape: f32[16,5], index: 0, kind: input, shape index: {}]   ;;  %s5167_s1 = inlined_call_operand.hbm [shape: f32[5,32], index: 1, kind: input, shape index: {}]   ;;  %s5168_s2 = inlined_call_operand.hbm [shape: f32[5,32], index: 2, kind: input, shape index: {}]   ;;  %s5169_s3 = inlined_call_operand.hbm [shape: f32[5,32], index: 3, kind: input, shape index: {}]   ;;  %s5170_s4 = inlined_call_operand.vmem [shape: f32[32,32], index: 4, kind: input, shape index: {}]   ;;  %s5171_s5 = inlined_call_operand.vmem [shape: f32[32,32], index: 5, kind: input, shape index: {}]   ;;  %s5172_s6 = inlined_call_operand.vmem [shape: f32[32,32], index: 6, kind: input, shape index: {}]   ;;  %s5173_s7 = inlined_call_operand.hbm [shape: f32[1,32], index: 7, kind: input, shape index: {}]   ;;  %s5174_s8 = inlined_call_operand.hbm [shape: f32[1,32], index: 8, kind: input, shape index: {}]   ;;  %s5175_s9 = inlined_call_operand.hbm [shape: f32[1,32], index: 9, kind: input, shape index: {}]   ;;  %s5176_s10 = inlined_call_operand.hbm [shape: f32[1,32], index: 10, kind: input, shape index: {}]   ;;  %s5177_s11 = inlined_call_operand.vmem [shape: f32[32,32], index: 11, kind: input, shape index: {}]   ;;  %s5178_s12 = inlined_call_operand.hbm [shape: f32[32,32], index: 12, kind: input, shape index: {}]   ;;  %s5179_s13 = inlined_call_operand.hbm [shape: f32[32,32], index: 13, kind: input, shape index: {}]   ;;  %s5180_s14 = inlined_call_operand.vmem [shape: f32[1,32], index: 14, kind: input, shape index: {}]   ;;  %s5181_s15 = inlined_call_operand.hbm [shape: f32[1,32], index: 15, kind: input, shape index: {}]   ;;  %s5182_s16 = inlined_call_operand.vmem [shape: f32[1,32], index: 16, kind: input, shape index: {}]   ;;  %s5183_s17 = inlined_call_operand.vmem [shape: f32[32,16], index: 17, kind: input, shape index: {}]   ;;  %s5184_s18 = inlined_call_operand.hbm [shape: f32[1,16], index: 18, kind: input, shape index: {}]   ;;  %s5185_s19 = inlined_call_operand.hbm [shape: f32[2,16], index: 19, kind: output, shape index: {}]  }
   0x1   :  { %5190 = sst [smem:[#allocation29_spill]] %s5166_s0 }
   0x2   :  { %5191 = sst [smem:[#allocation30_spill]] %s5167_s1 }
   0x3   :  { %5192 = sst [smem:[#allocation31_spill]] %s5168_s2 }
   0x4   :  { %5193 = sst [smem:[#allocation32_spill]] %s5169_s3 }
   0x5   :  { %24 = vsyncpa [#allocation4], 0 }
   0x6   :  { %25 = vsyncpa [#allocation7], 0 }
   0x7   :  { %26 = vsyncpa [#allocation10], 0 }
   0x8   :  { %27 = vsyncpa [#allocation13], 0 }
   0x9   :  { %28 = vsyncpa [#allocation16], 0 }
   0xa   :  { %29 = vsyncpa [#allocation19], 0 }
   0xb   :  { %30 = vsyncpa [#allocation5], 0  ;;  %s4491_s0 = smov [#allocation6]   ;;  %s4492_s20 = smov [#allocation9]  }
   0xc   :  { %s49_s30 = sshll.u32 %s4491_s0, 4  ;;  %s75_s21 = sshll.u32 %s4492_s20, 4  ;;  %s50_s30 = int_to_ptr.vmem [resolvable:$true] %s49_s30  ;;  %s76_s21 = int_to_ptr.vmem [resolvable:$true] %s75_s21 }
   0xd   :  { %s5194_s2 = sld [smem:[#allocation31_spill]] }
  0x13   :  { %s4213_s23 = scalar_lea.hbm %s5194_s2, 128 }
  0x14   :  { %p4214_p0 = scmp.ne.s32.totalorder %s5194_s2, %s4213_s23  ;;  %p4217_p1 = scmp.lt.u32.totalorder %s4213_s23, %s5194_s2 }
  0x16   :  { %p4219_p2 = pnand %p4217_p1, %p4214_p0 }
  0x18   :  { %4222 = shalt.err (!%p4219_p2)
}
  0x19   :  { %s4223_s27 = scalar_lea.vmem %s50_s30, 128  ;;  %p4228_p4 = scmp.lt.s32.totalorder %s50_s30, %s50_s30 }
  0x1a   :  { %p4224_p3 = scmp.ne.s32.totalorder %s50_s30, %s4223_s27  ;;  %p4229_p5 = scmp.lt.s32.totalorder %s4223_s27, %s4223_s27 }
  0x1c   :  { %p4230_p6 = por %p4229_p5, %p4228_p4 }
  0x1e   :  { %p4231_p7 = pnand %p4230_p6, %p4224_p3 }
  0x20   :  { %4234 = shalt.err (!%p4231_p7)
}
  0x21   :  { %52 = dma.hbm_to_vmem [thread:$0]  %s5194_s2, 128, %s50_s30, [#allocation7]  }
  0x22   :  { %s4235_s1 = scalar_lea.hbm %s5173_s7, 16 }
  0x23   :  { %p4236_p8 = scmp.ne.s32.totalorder %s5173_s7, %s4235_s1  ;;  %p4239_p9 = scmp.lt.u32.totalorder %s4235_s1, %s5173_s7 }
  0x25   :  { %p4241_p10 = pnand %p4239_p9, %p4236_p8 }
  0x27   :  { %4244 = shalt.err (!%p4241_p10)
}
  0x28   :  { %s4245_s3 = scalar_lea.vmem %s76_s21, 16  ;;  %s4249_s26 = scalar_lea.vmem %s76_s21, 32 }
  0x29   :  { %p4246_p11 = scmp.ne.s32.totalorder %s76_s21, %s4245_s3  ;;  %p4250_p12 = scmp.lt.s32.totalorder %s76_s21, %s76_s21 }
  0x2a   :  { %p4251_p13 = scmp.lt.s32.totalorder %s4249_s26, %s4245_s3 }
  0x2c   :  { %p4252_p0 = por %p4251_p13, %p4250_p12 }
  0x2e   :  { %p4253_p1 = pnand %p4252_p0, %p4246_p11 }
  0x30   :  { %4256 = shalt.err (!%p4253_p1)
}
  0x31   :  { %78 = dma.hbm_to_vmem [thread:$0]  %s5173_s7, 16, %s76_s21, [#allocation10]  }
  0x32   :  { %s4493_s27 = smov [#allocation12]   ;;  %s4494_s29 = smov [#allocation15]  }
  0x33   :  { %s95_s28 = sshll.u32 %s4493_s27, 4  ;;  %s116_s0 = sshll.u32 %s4494_s29, 4  ;;  %s96_s28 = int_to_ptr.vmem [resolvable:$true] %s95_s28  ;;  %s4633_s0 = int_to_ptr.vmem [resolvable:$true] %s116_s0 }
  0x34   :  { %s4257_s22 = scalar_lea.hbm %s5175_s9, 16 }
  0x35   :  { %p4258_p2 = scmp.ne.s32.totalorder %s5175_s9, %s4257_s22  ;;  %p4261_p3 = scmp.lt.u32.totalorder %s4257_s22, %s5175_s9 }
  0x37   :  { %p4263_p4 = pnand %p4261_p3, %p4258_p2 }
  0x39   :  { %4266 = shalt.err (!%p4263_p4)
}
  0x3a   :  { %s4267_s7 = scalar_lea.vmem %s96_s28, 16  ;;  %s4271_s21 = scalar_lea.vmem %s96_s28, 32 }
  0x3b   :  { %p4268_p5 = scmp.ne.s32.totalorder %s96_s28, %s4267_s7  ;;  %p4272_p6 = scmp.lt.s32.totalorder %s96_s28, %s96_s28 }
  0x3c   :  { %p4273_p7 = scmp.lt.s32.totalorder %s4271_s21, %s4267_s7 }
  0x3e   :  { %p4274_p8 = por %p4273_p7, %p4272_p6 }
  0x40   :  { %p4275_p9 = pnand %p4274_p8, %p4268_p5 }
  0x42   :  { %4278 = shalt.err (!%p4275_p9)
}
  0x43   :  { %98 = dma.hbm_to_vmem [thread:$0]  %s5175_s9, 16, %s96_s28, [#allocation13]  }
  0x44   :  { %s4279_s29 = scalar_lea.hbm %s5178_s12, 512 }
  0x45   :  { %p4280_p10 = scmp.ne.s32.totalorder %s5178_s12, %s4279_s29  ;;  %p4283_p11 = scmp.lt.u32.totalorder %s4279_s29, %s5178_s12 }
  0x47   :  { %p4285_p12 = pnand %p4283_p11, %p4280_p10 }
  0x49   :  { %4288 = shalt.err (!%p4285_p12)
}
  0x4a   :  { %s4289_s23 = scalar_lea.vmem %s4633_s0, 512  ;;  %p4294_p0 = scmp.lt.s32.totalorder %s4633_s0, %s4633_s0 }
  0x4b   :  { %p4290_p13 = scmp.ne.s32.totalorder %s4633_s0, %s4289_s23  ;;  %p4295_p1 = scmp.lt.s32.totalorder %s4289_s23, %s4289_s23 }
  0x4d   :  { %p4296_p2 = por %p4295_p1, %p4294_p0 }
  0x4f   :  { %p4297_p3 = pnand %p4296_p2, %p4290_p13 }
  0x51   :  { %4300 = shalt.err (!%p4297_p3)
}
  0x52   :  { %s4495_s9 = smov 128   ;;  %s4496_s28 = smov 8  }
  0x53   :  { %122 = dma.hbm_to_vmem [thread:$0]  %s5178_s12, 512, %s4633_s0, [#allocation16], %s4495_s9, %s4495_s9, %s4496_s28  }
  0x54   :  { %s4497_s7 = smov [#allocation18]   ;;  %s4498_s26 = smov [#allocation3]  }
  0x55   :  { %s143_s21 = sshll.u32 %s4497_s7, 4  ;;  %s39_s30 = sshll.u32 %s4498_s26, 4  ;;  %s144_s21 = int_to_ptr.vmem [resolvable:$true] %s143_s21  ;;  %s40_s30 = int_to_ptr.vmem [resolvable:$true] %s39_s30 }
  0x56   :  { %s4301_s29 = scalar_lea.hbm %s5181_s15, 16 }
  0x57   :  { %p4302_p4 = scmp.ne.s32.totalorder %s5181_s15, %s4301_s29  ;;  %p4305_p5 = scmp.lt.u32.totalorder %s4301_s29, %s5181_s15 }
  0x59   :  { %p4307_p6 = pnand %p4305_p5, %p4302_p4 }
  0x5b   :  { %4310 = shalt.err (!%p4307_p6)
}
  0x5c   :  { %s4311_s12 = scalar_lea.vmem %s144_s21, 16  ;;  %s4315_s0 = scalar_lea.vmem %s144_s21, 32 }
  0x5d   :  { %p4312_p7 = scmp.ne.s32.totalorder %s144_s21, %s4311_s12  ;;  %p4316_p8 = scmp.lt.s32.totalorder %s144_s21, %s144_s21 }
  0x5e   :  { %p4317_p9 = scmp.lt.s32.totalorder %s4315_s0, %s4311_s12 }
  0x60   :  { %p4318_p10 = por %p4317_p9, %p4316_p8 }
  0x62   :  { %p4319_p11 = pnand %p4318_p10, %p4312_p7 }
  0x64   :  { %4322 = shalt.err (!%p4319_p11)
}
  0x65   :  { %146 = dma.hbm_to_vmem [thread:$0]  %s5181_s15, 16, %s144_s21, [#allocation19]  }
  0x66   :  { %s5195_s26 = sld [smem:[#allocation30_spill]] }
  0x6c   :  { %s4323_s2 = scalar_lea.hbm %s5195_s26, 128 }
  0x6d   :  { %p4324_p12 = scmp.ne.s32.totalorder %s5195_s26, %s4323_s2  ;;  %p4327_p13 = scmp.lt.u32.totalorder %s4323_s2, %s5195_s26 }
  0x6f   :  { %p4329_p0 = pnand %p4327_p13, %p4324_p12 }
  0x71   :  { %4332 = shalt.err (!%p4329_p0)
}
  0x72   :  { %s4333_s22 = scalar_lea.vmem %s40_s30, 128  ;;  %p4338_p2 = scmp.lt.s32.totalorder %s40_s30, %s40_s30 }
  0x73   :  { %p4334_p1 = scmp.ne.s32.totalorder %s40_s30, %s4333_s22  ;;  %p4339_p3 = scmp.lt.s32.totalorder %s4333_s22, %s4333_s22 }
  0x75   :  { %p4340_p4 = por %p4339_p3, %p4338_p2 }
  0x77   :  { %p4341_p5 = pnand %p4340_p4, %p4334_p1 }
  0x79   :  { %4344 = shalt.err (!%p4341_p5)
}
  0x7a   :  { %42 = dma.hbm_to_vmem [thread:$0]  %s5195_s26, 128, %s40_s30, [#allocation4]  }
  0x7b   :  { %s4499_s24 = smov [#allocation8]   ;;  %s4500_s0 = smov [#allocation11]  }
  0x7c   :  { %s59_s12 = sshll.u32 %s4499_s24, 4  ;;  %s85_s23 = sshll.u32 %s4500_s0, 4  ;;  %s60_s12 = int_to_ptr.vmem [resolvable:$true] %s59_s12  ;;  %s86_s23 = int_to_ptr.vmem [resolvable:$true] %s85_s23 }
  0x7d   :  { %s5196_s7 = sld [smem:[#allocation32_spill]] }
  0x83   :  { %s4345_s2 = scalar_lea.hbm %s5196_s7, 128 }
  0x84   :  { %p4346_p6 = scmp.ne.s32.totalorder %s5196_s7, %s4345_s2  ;;  %p4349_p7 = scmp.lt.u32.totalorder %s4345_s2, %s5196_s7 }
  0x86   :  { %p4351_p8 = pnand %p4349_p7, %p4346_p6 }
  0x88   :  { %4354 = shalt.err (!%p4351_p8)
}
  0x89   :  { %s4355_s30 = scalar_lea.vmem %s60_s12, 128  ;;  %p4360_p10 = scmp.lt.s32.totalorder %s60_s12, %s60_s12 }
  0x8a   :  { %p4356_p9 = scmp.ne.s32.totalorder %s60_s12, %s4355_s30  ;;  %p4361_p11 = scmp.lt.s32.totalorder %s4355_s30, %s4355_s30 }
  0x8c   :  { %p4362_p12 = por %p4361_p11, %p4360_p10 }
  0x8e   :  { %p4363_p13 = pnand %p4362_p12, %p4356_p9 }
  0x90   :  { %4366 = shalt.err (!%p4363_p13)
}
  0x91   :  { %62 = dma.hbm_to_vmem [thread:$0]  %s5196_s7, 128, %s60_s12, [#allocation7]  }
  0x92   :  { %s4367_s24 = scalar_lea.hbm %s5174_s8, 16 }
  0x93   :  { %p4368_p0 = scmp.ne.s32.totalorder %s5174_s8, %s4367_s24  ;;  %p4371_p1 = scmp.lt.u32.totalorder %s4367_s24, %s5174_s8 }
  0x95   :  { %p4373_p2 = pnand %p4371_p1, %p4368_p0 }
  0x97   :  { %4376 = shalt.err (!%p4373_p2)
}
  0x98   :  { %s4377_s27 = scalar_lea.vmem %s86_s23, 16  ;;  %s4381_s29 = scalar_lea.vmem %s86_s23, 32 }
  0x99   :  { %p4378_p3 = scmp.ne.s32.totalorder %s86_s23, %s4377_s27  ;;  %p4382_p4 = scmp.lt.s32.totalorder %s86_s23, %s86_s23 }
  0x9a   :  { %p4383_p5 = scmp.lt.s32.totalorder %s4381_s29, %s4377_s27 }
  0x9c   :  { %p4384_p6 = por %p4383_p5, %p4382_p4 }
  0x9e   :  { %p4385_p7 = pnand %p4384_p6, %p4378_p3 }
  0xa0   :  { %4388 = shalt.err (!%p4385_p7)
}
  0xa1   :  { %88 = dma.hbm_to_vmem [thread:$0]  %s5174_s8, 16, %s86_s23, [#allocation10]  }
  0xa2   :  { %s4501_s20 = smov [#allocation14]   ;;  %s4502_s30 = smov [#allocation17]  }
  0xa3   :  { %s105_s1 = sshll.u32 %s4501_s20, 4  ;;  %s128_s26 = sshll.u32 %s4502_s30, 4  ;;  %s106_s1 = int_to_ptr.vmem [resolvable:$true] %s105_s1  ;;  %s4715_s26 = int_to_ptr.vmem [resolvable:$true] %s128_s26 }
  0xa4   :  { %s4389_s21 = scalar_lea.hbm %s5176_s10, 16 }
  0xa5   :  { %p4390_p8 = scmp.ne.s32.totalorder %s5176_s10, %s4389_s21  ;;  %p4393_p9 = scmp.lt.u32.totalorder %s4389_s21, %s5176_s10 }
  0xa7   :  { %p4395_p10 = pnand %p4393_p9, %p4390_p8 }
  0xa9   :  { %4398 = shalt.err (!%p4395_p10)
}
  0xaa   :  { %s4399_s8 = scalar_lea.vmem %s106_s1, 16  ;;  %s4403_s23 = scalar_lea.vmem %s106_s1, 32 }
  0xab   :  { %p4400_p11 = scmp.ne.s32.totalorder %s106_s1, %s4399_s8  ;;  %p4404_p12 = scmp.lt.s32.totalorder %s106_s1, %s106_s1 }
  0xac   :  { %p4405_p13 = scmp.lt.s32.totalorder %s4403_s23, %s4399_s8 }
  0xae   :  { %p4406_p0 = por %p4405_p13, %p4404_p12 }
  0xb0   :  { %p4407_p1 = pnand %p4406_p0, %p4400_p11 }
  0xb2   :  { %4410 = shalt.err (!%p4407_p1)
}
  0xb3   :  { %108 = dma.hbm_to_vmem [thread:$0]  %s5176_s10, 16, %s106_s1, [#allocation13]  }
  0xb4   :  { %s4411_s7 = scalar_lea.hbm %s5179_s13, 512 }
  0xb5   :  { %p4412_p2 = scmp.ne.s32.totalorder %s5179_s13, %s4411_s7  ;;  %p4415_p3 = scmp.lt.u32.totalorder %s4411_s7, %s5179_s13 }
  0xb7   :  { %p4417_p4 = pnand %p4415_p3, %p4412_p2 }
  0xb9   :  { %4420 = shalt.err (!%p4417_p4)
}
  0xba   :  { %s4421_s21 = scalar_lea.vmem %s4715_s26, 512  ;;  %p4426_p6 = scmp.lt.s32.totalorder %s4715_s26, %s4715_s26 }
  0xbb   :  { %p4422_p5 = scmp.ne.s32.totalorder %s4715_s26, %s4421_s21  ;;  %p4427_p7 = scmp.lt.s32.totalorder %s4421_s21, %s4421_s21 }
  0xbd   :  { %p4428_p8 = por %p4427_p7, %p4426_p6 }
  0xbf   :  { %p4429_p9 = pnand %p4428_p8, %p4422_p5 }
  0xc1   :  { %4432 = shalt.err (!%p4429_p9)
}
  0xc2   :  { %134 = dma.hbm_to_vmem [thread:$0]  %s5179_s13, 512, %s4715_s26, [#allocation16], %s4495_s9, %s4495_s9, %s4496_s28  }
  0xc3   :  { %s4503_s24 = smov [#allocation20]   ;;  %s4433_s8 = scalar_lea.hbm %s5184_s18, 16 }
  0xc4   :  { %s157_s0 = sshll.u32 %s4503_s24, 4  ;;  %p4434_p10 = scmp.ne.s32.totalorder %s5184_s18, %s4433_s8  ;;  %s158_s0 = int_to_ptr.vmem [resolvable:$true] %s157_s0 }
  0xc5   :  { %p4437_p11 = scmp.lt.u32.totalorder %s4433_s8, %s5184_s18 }
  0xc7   :  { %p4439_p12 = pnand %p4437_p11, %p4434_p10 }
  0xc9   :  { %4442 = shalt.err (!%p4439_p12)
}
  0xca   :  { %s4443_s12 = scalar_lea.vmem %s158_s0, 16  ;;  %s4447_s13 = scalar_lea.vmem %s158_s0, 32 }
  0xcb   :  { %p4444_p13 = scmp.ne.s32.totalorder %s158_s0, %s4443_s12  ;;  %p4448_p0 = scmp.lt.s32.totalorder %s158_s0, %s158_s0 }
  0xcc   :  { %p4449_p1 = scmp.lt.s32.totalorder %s4447_s13, %s4443_s12 }
  0xce   :  { %p4450_p2 = por %p4449_p1, %p4448_p0 }
  0xd0   :  { %p4451_p3 = pnand %p4450_p2, %p4444_p13 }
  0xd2   :  { %4454 = shalt.err (!%p4451_p3)
}
  0xd3   :  { %160 = dma.hbm_to_vmem [thread:$0]  %s5184_s18, 16, %s158_s0, [#allocation19]  }
  0xd4   :  { %4477 = dma.done.wait [#allocation4], 128  }
  0xd5   :  { %4478 = vsyncadd [#allocation4], 4294967168 }
  0xd6   :  { %4479 = dma.done.wait [#allocation7], 256  }
  0xd7   :  { %4480 = vsyncadd [#allocation7], 4294967040 }
  0xd8   :  { %4481 = dma.done.wait [#allocation10], 32  }
  0xd9   :  { %4482 = vsyncadd [#allocation10], 4294967264 }
  0xda   :  { %4483 = dma.done.wait [#allocation13], 32  }
  0xdb   :  { %4484 = vsyncadd [#allocation13], 4294967264 }
  0xdc   :  { %4485 = dma.done.wait [#allocation16], 1024  }
  0xdd   :  { %4486 = vsyncadd [#allocation16], 4294966272 }
  0xde   :  { %4487 = dma.done.wait [#allocation19], 32  }
  0xdf   :  { %4488 = vsyncadd [#allocation19], 4294967264  ;;  %vm211_vm0 = vcmask 1044480   ;;  %vm204_vm1 = vcmask 39936   ;;  %v196_v0 = vld [vmem:[#allocation3] sm:$0x1f]  ;;  %v720_v61 = vlaneseq }
  0xe0   :  { %v290_v1 = vld [vmem:[#allocation6] sm:$0x1f]  ;;  %s5197_s20 = sld [smem:[#allocation29_spill]]  ;;  %3588 = vmatprep.subr.msk.mxu0 %vm211_vm0, %v196_v0  ;;  %v376_v4 = vld [vmem:[#allocation8] sm:$0x1f]  ;;  %v463_v6 = vld [vmem:[%s5170_s4 + $0x8] sm:$0xff] }
  0xe1   :  { %3593 = vmatprep.subr.msk.mxu1 %vm211_vm0, %v290_v1  ;;  %v462_v5 = vld [vmem:[%s5170_s4] sm:$0xff]  ;;  %3589 = vmatpush3.msk.msra.mxu0 %vm211_vm0, %v196_v0  ;;  %v467_v8 = vld [vmem:[%s5171_s5 + $0x8] sm:$0xff]  ;;  %v464_v10 = vld [vmem:[%s5170_s4 + $0x10] sm:$0xff]  ;;  %v4504_v12 = vmov 0.0|0.0   ;;  %vm4505_vm2 = vmmov 0   ;;  %v4506_v19 = vmov 0.0  }
  0xe2   :  { %v466_v7 = vld [vmem:[%s5171_s5] sm:$0xff]  ;;  %3594 = vmatpush3.msk.msra.mxu1 %vm211_vm0, %v290_v1  ;;  %v4785_v9 = vpack.c.bf16 %v463_v6, %v462_v5  ;;  %v465_v11 = vld [vmem:[%s5170_s4 + $0x18] sm:$0xff]  ;;  %3598 = vmatprep.subr.msk.mxu0 %vm211_vm0, %v376_v4  ;;  %v468_v15 = vld [vmem:[%s5171_s5 + $0x10] sm:$0xff]  ;;  %v4507_v59 = vmov 1966171168   ;;  %v721_v0 = vshrl.u32 %v720_v61, 7 }
  0xe3   :  { %3931 = vmatprep.subr.bf16.mxu1 %v4504_v12  ;;  %v4797_v13 = vpack.c.bf16 %v467_v8, %v466_v7  ;;  %v4801_v14 = vpack.c.bf16 %v465_v11, %v464_v10  ;;  %v469_v16 = vld [vmem:[%s5171_s5 + $0x18] sm:$0xff]  ;;  %v470_v17 = vld [vmem:[%s5172_s6] sm:$0xff]  ;;  %v471_v18 = vld [vmem:[%s5172_s6 + $0x8] sm:$0xff]  ;;  %v718_v60 = vunpack.c.l.s4 %v4507_v59  ;;  %vm475_vm3 = vcmask 261120  }
  0xe4   :  { %v4822_v20 = vpack.c.bf16 %v469_v16, %v468_v15  ;;  %v4826_v21 = vpack.c.bf16 %v471_v18, %v470_v17  ;;  %v472_v22 = vld [vmem:[%s5172_s6 + $0x10] sm:$0xff]  ;;  %v473_v23 = vld [vmem:[%s5172_s6 + $0x18] sm:$0xff]  ;;  %v3365_v25 = vld [vmem:[#allocation11] ss:$0 sm:$0xff]  ;;  %vm741_vm4 = vcmask 253952   ;;  %vm3068_vm5 = vcmask 64512  }
  0xe5   :  { %v4840_v24 = vpack.c.bf16 %v473_v23, %v472_v22  ;;  %v3361_v26 = vld [vmem:[#allocation9] ss:$0 sm:$0xff]  ;;  %v3369_v33 = vld [vmem:[#allocation12] ss:$0 sm:$0xff]  ;;  %v4874_v52 = vld [vmem:[#allocation14] ss:$0 sm:$0xff]  ;;  %v719_v63 = vunpack.c.0.s8 %v718_v60 }
  0xe6   :  { %v194_v2 = vld [vmem:[%s5197_s20] sm:$0xff]  ;;  %v195_v3 = vld [vmem:[%s5197_s20 + $0x8] sm:$0xff]  ;;  %vm3264_vm6 = vcmask 1041409   ;;  %vm3339_vm7 = vcmask 123904  }
  0xe7   :  { %3590 = vmatprep.mubr.msk.f32.mxu0 %vm204_vm1, %v194_v2  ;;  %3595 = vmatprep.mubr.msk.f32.mxu1 %vm204_vm1, %v194_v2  ;;  %v4880_v5 = vsub.s32 %v719_v63, %v721_v0 }
  0xe8   :  { %3591 = vmatmul.mubr.msk.f32.vlgmr.msra.gmra.mrb[0].mxu0 %vm204_vm1, %v195_v3  ;;  %3596 = vmatmul.mubr.msk.f32.vlgmr.msra.gmra.mrb[0].mxu1 %vm204_vm1, %v195_v3 }
  0xe9   :  { %3933 = vmatpush3.bf16.msra.mxu1 %v4785_v9  ;;  %3599 = vmatpush3.msk.msra.mxu0 %vm211_vm0, %v376_v4 }
  0xea   :  { %3600 = vmatprep.mubr.msk.f32.mxu0 %vm204_vm1, %v194_v2  ;;  %3937 = vmatprep.subr.bf16.mxu0 %v4504_v12 }
  0xeb   :  { %3934 = vmatprep.subr.bf16.mxu1 %v4504_v12  ;;  %3611 = vmatprep.mubr.msk.f32.mxu1 %vm4505_vm2, %v4506_v19 }
  0xec   :  { %3601 = vmatmul.mubr.msk.f32.vlgmr.msra.gmra.mrb[2].mxu0 %vm204_vm1, %v195_v3 }
  0xed   :  { %3939 = vmatpush3.bf16.msra.mxu0 %v4797_v13  ;;  %3936 = vmatpush3.bf16.msra.mxu1 %v4801_v14 }
  0xee   :  { %3940 = vmatprep.subr.bf16.mxu0 %v4504_v12  ;;  %3622 = vmatprep.mubr.msk.f32.mxu0 %vm4505_vm2, %v4506_v19 }
  0xef   :  { %3943 = vmatprep.subr.bf16.mxu1 %v4504_v12 }
  0xf0   :  { %3612 = vmatmul.mubr.f32.vlgmr.msra.gmra.mrb[2].mxu1 %v4506_v19 }
  0xf1   :  { %3942 = vmatpush3.bf16.msra.mxu0 %v4822_v20  ;;  %3945 = vmatpush3.bf16.msra.mxu1 %v4826_v21 }
  0xf2   :  { %3633 = vmatprep.mubr.msk.f32.mxu1 %vm4505_vm2, %v4506_v19  ;;  %3946 = vmatprep.subr.bf16.mxu1 %v4504_v12 }
  0xf3   :  { %3949 = vmatprep.subr.bf16.mxu0 %v4504_v12 }
  0xf4   :  { %3623 = vmatmul.mubr.f32.vlgmr.msra.gmra.mrb[4].mxu0 %v4506_v19 }
  0xf5   :  { %3951 = vmatpush3.bf16.msra.mxu0 %v4785_v9  ;;  %3644 = vmatprep.mubr.msk.f32.mxu0 %vm4505_vm2, %v4506_v19 }
  0xf6   :  { %3948 = vmatpush3.bf16.msra.mxu1 %v4840_v24  ;;  %3952 = vmatprep.subr.bf16.mxu0 %v4504_v12 }
  0xf7   :  { %3955 = vmatprep.subr.bf16.mxu1 %v4504_v12 }
  0xf9   :  { %3634 = vmatmul.mubr.f32.vlgmr.msra.gmra.mrb[4].mxu1 %v4506_v19  ;;  %3954 = vmatpush3.bf16.msra.mxu0 %v4801_v14 }
  0xfa   :  { %3957 = vmatpush3.bf16.msra.mxu1 %v4797_v13  ;;  %3655 = vmatprep.mubr.msk.f32.mxu1 %vm4505_vm2, %v4506_v19 }
  0xfb   :  { %3958 = vmatprep.subr.bf16.mxu1 %v4504_v12  ;;  %3961 = vmatprep.subr.bf16.mxu0 %v4504_v12 }
  0xfe   :  { %3960 = vmatpush3.bf16.msra.mxu1 %v4822_v20 }
  0xff   :  { %3967 = vmatprep.subr.bf16.mxu1 %v4504_v12 }
 0x1bb   :  { %v3597_v27 = vpop.f32.mrb[0].mxu1  ;;  %v3592_v28 = vpop.f32.mrb[0].mxu0 }
 0x1bc   :  { %v4862_v29 = vadd.f32 %v3597_v27, %v3365_v25  ;;  %v367_v30 = vpop.f32.mrb[1].mxu1  ;;  %v4864_v31 = vadd.f32 %v3592_v28, %v3361_v26  ;;  %v281_v32 = vpop.f32.mrb[1].mxu0 }
 0x1bd   :  { %v4868_v37 = vadd.f32 %v3361_v26, %v281_v32  ;;  %v4871_v41 = vadd.f32 %v3365_v25, %v367_v30 }
 0x1bf   :  { %v3602_v34 = vpop.f32.mrb[2].mxu0 }
 0x1c0   :  { %v4866_v35 = vadd.f32 %v3602_v34, %v3369_v33  ;;  %v453_v36 = vpop.f32.mrb[3].mxu0 }
 0x1c1   :  { %v4877_v56 = vadd.f32 %v3369_v33, %v453_v36 }
 0x1c3   :  { %v545_v38 = vpop.f32.mrb[2].mxu1 }
 0x1c4   :  { %v695_v39 = vadd.f32 %v545_v38, %v4868_v37  ;;  %v3613_v40 = vpop.f32.mrb[3].mxu1 }
 0x1c6   :  { %v3374_v42 = vmul.f32 -1.442695, %v695_v39 }
 0x1c7   :  { %v615_v43 = vpop.f32.mrb[4].mxu0 }
 0x1c8   :  { %v702_v44 = vadd.f32 %v615_v43, %v4871_v41  ;;  %v3624_v45 = vpop.f32.mrb[5].mxu0  ;;  %4123 = vpow2.f32 %v3374_v42 }
 0x1ca   :  { %v3375_v46 = vmul.f32 -1.442695, %v702_v44 }
 0x1cc   :  { %v691_v47 = vpop.f32.mrb[4].mxu1  ;;  %4125 = vpow2.f32 %v3375_v46 }
 0x1cd   :  { %v3635_v48 = vpop.f32.mrb[5].mxu1  ;;  %v692_v54 = vadd.f32 %v4874_v52, %v691_v47 }
 0x1d2   :  { %v4124_v49 = vpop.eup %4123 }
 0x1d3   :  { %v699_v50 = vadd.f32 1.0, %v4124_v49 }
 0x1d5   :  { %4127 = vrcp.f32 %v699_v50 }
 0x1d6   :  { %v4126_v51 = vpop.eup %4125 }
 0x1d7   :  { %v706_v53 = vadd.f32 1.0, %v4126_v51 }
 0x1d9   :  { %4129 = vrcp.f32 %v706_v53 }
 0x1df   :  { %v4128_v55 = vpop.eup %4127 }
 0x1e0   :  { %v709_v57 = vmul.f32 %v4128_v55, %v692_v54 }
 0x1e2   :  { %v710_v58 = vadd.f32 %v709_v57, %v4877_v56 }
 0x1e3   :  { %v4130_v62 = vpop.eup %4129 }
 0x1e4   :  { %4131 = vtanh.f32 %v710_v58  ;;  %v712_v1 = vsub.f32 1.0, %v4130_v62  ;;  %v714_v4 = vmul.f32 0.0, %v4130_v62 }
 0x1ee   :  { %v4132_v2 = vpop.eup %4131 }
 0x1ef   :  { %v713_v3 = vmul.f32 %v4132_v2, %v712_v1 }
 0x1f1   :  { %v715_v6 = vadd.f32 %v714_v4, %v713_v3 }
 0x1f3   :  { %v723_v7 = vrot.slane %v715_v6, %v4880_v5  ;;  %3645 = vmatmul.mubr.msk.f32.vlgmr.msra.gmra.mrb[6].mxu0 %vm475_vm3, %v715_v6  ;;  %3656 = vmatmul.mubr.msk.f32.vlgmr.msra.gmra.mrb[6].mxu1 %vm475_vm3, %v715_v6  ;;  %v984_v43 = vrot.slane %v715_v6, 6 }
 0x1f4   :  { %3963 = vmatpush3.bf16.msra.mxu0 %v4826_v21  ;;  %3666 = vmatprep.mubr.msk.f32.mxu0 %vm4505_vm2, %v4506_v19 }
 0x1f5   :  { %v724_v8 = vcombine.high %v723_v7, %v723_v7  ;;  %v731_v10 = vrot.slane %v723_v7, %v4880_v5  ;;  %3964 = vmatprep.subr.bf16.mxu0 %v4504_v12  ;;  %3969 = vmatpush3.bf16.msra.mxu1 %v4785_v9 }
 0x1f6   :  { %3970 = vmatprep.subr.bf16.mxu1 %v4504_v12  ;;  %3677 = vmatprep.mubr.msk.f32.mxu1 %vm4505_vm2, %v4506_v19 }
 0x1f7   :  { %v738_v11 = vrot.slane %v724_v8, %v4880_v5  ;;  %742 = vst.msk [vmem:[#allocation2] sm:$0x1] %vm741_vm4, %v731_v10 }
 0x1f8   :  { %3966 = vmatpush3.bf16.msra.mxu0 %v4840_v24 }
 0x1f9   :  { %743 = vst.msk [vmem:[#allocation2 + $0x8] sm:$0x1] %vm741_vm4, %v738_v11  ;;  %3973 = vmatprep.subr.bf16.mxu0 %v4504_v12  ;;  %3972 = vmatpush3.bf16.msra.mxu1 %v4801_v14 }
 0x1fa   :  { %3979 = vmatprep.subr.bf16.mxu1 %v4504_v12 }
 0x1fb   :  { %3667 = vmatmul.mubr.msk.f32.vlgmr.msra.gmra.mrb[8].mxu0 %vm475_vm3, %v715_v6 }
 0x1fc   :  { %3975 = vmatpush3.bf16.msra.mxu0 %v4797_v13  ;;  %3688 = vmatprep.mubr.msk.f32.mxu0 %vm4505_vm2, %v4506_v19 }
 0x1fd   :  { %3976 = vmatprep.subr.bf16.mxu0 %v4504_v12 }
 0x200   :  { %3978 = vmatpush3.bf16.msra.mxu0 %v4822_v20 }
 0x201   :  { %3985 = vmatprep.subr.bf16.mxu0 %v4504_v12 }
 0x2c6   :  { %v812_v15 = vpop.f32.mrb[6].mxu0  ;;  %v882_v16 = vpop.f32.mrb[6].mxu1 }
 0x2c7   :  { %v957_v17 = vrot.slane %v812_v15, 6  ;;  %v967_v18 = vrot.slane %v882_v16, 6  ;;  %v3646_v22 = vpop.f32.mrb[7].mxu0  ;;  %v3657_v23 = vpop.f32.mrb[7].mxu1 }
 0x2c9   :  { %v959_v25 = vadd.f32 %v957_v17, %v4868_v37  ;;  %v969_v26 = vadd.f32 %v967_v18, %v4871_v41 }
 0x2cb   :  { %v3379_v27 = vmul.f32 -1.442695, %v959_v25  ;;  %v3380_v28 = vmul.f32 -1.442695, %v969_v26 }
 0x2cd   :  { %4133 = vpow2.f32 %v3379_v27 }
 0x2ce   :  { %4135 = vpow2.f32 %v3380_v28  ;;  %v952_v30 = vpop.f32.mrb[8].mxu0 }
 0x2cf   :  { %v3668_v32 = vpop.f32.mrb[9].mxu0  ;;  %v953_v39 = vadd.f32 %v4874_v52, %v952_v30 }
 0x2d1   :  { %v977_v40 = vrot.slane %v953_v39, 6 }
 0x2d7   :  { %v4134_v33 = vpop.eup %4133 }
 0x2d8   :  { %v4136_v34 = vpop.eup %4135  ;;  %v963_v36 = vadd.f32 1.0, %v4134_v33 }
 0x2d9   :  { %v973_v38 = vadd.f32 1.0, %v4136_v34 }
 0x2da   :  { %4137 = vrcp.f32 %v963_v36 }
 0x2db   :  { %4139 = vrcp.f32 %v973_v38 }
 0x2e4   :  { %v4138_v42 = vpop.eup %4137 }
 0x2e5   :  { %v4140_v44 = vpop.eup %4139  ;;  %v979_v45 = vmul.f32 %v4138_v42, %v977_v40 }
 0x2e6   :  { %v986_v46 = vmul.f32 %v4140_v44, %v984_v43  ;;  %v982_v48 = vsub.f32 1.0, %v4140_v44 }
 0x2e7   :  { %v980_v47 = vadd.f32 %v979_v45, %v4877_v56 }
 0x2e9   :  { %4141 = vtanh.f32 %v980_v47 }
 0x2f3   :  { %v4142_v49 = vpop.eup %4141 }
 0x2f4   :  { %v983_v50 = vmul.f32 %v4142_v49, %v982_v48 }
 0x2f6   :  { %v987_v51 = vadd.f32 %v986_v46, %v983_v50 }
 0x2f8   :  { %v995_v53 = vrot.slane %v987_v51, %v4880_v5  ;;  %v1017_v54 = vrot.slane %v987_v51, 2  ;;  %v1258_v25 = vrot.slane %v987_v51, 6 }
 0x2fa   :  { %v996_v55 = vcombine.high %v995_v53, %v995_v53  ;;  %v1003_v57 = vrot.slane %v995_v53, %v4880_v5  ;;  %3678 = vmatmul.mubr.msk.f32.vlgmr.msra.gmra.mrb[8].mxu1 %vm475_vm3, %v1017_v54  ;;  %3689 = vmatmul.mubr.msk.f32.vlgmr.msra.gmra.mrb[10].mxu0 %vm475_vm3, %v1017_v54 }
 0x2fb   :  { %3981 = vmatpush3.bf16.msra.mxu1 %v4826_v21  ;;  %3699 = vmatprep.mubr.msk.f32.mxu1 %vm4505_vm2, %v4506_v19 }
 0x2fc   :  { %v1010_v58 = vrot.slane %v996_v55, %v4880_v5  ;;  %v1011_v59 = vcombine.high %v1003_v57, %v1003_v57  ;;  %3982 = vmatprep.subr.bf16.mxu1 %v4504_v12  ;;  %3987 = vmatpush3.bf16.msra.mxu0 %v4785_v9 }
 0x2fd   :  { %3988 = vmatprep.subr.bf16.mxu0 %v4504_v12  ;;  %3710 = vmatprep.mubr.msk.f32.mxu0 %vm4505_vm2, %v4506_v19 }
 0x2fe   :  { %v1012_v60 = vcombine.high %v1010_v58, %v1010_v58  ;;  %1015 = vst.msk [vmem:[#allocation2 + $0x1] sm:$0x1] %vm741_vm4, %v1011_v59 }
 0x2ff   :  { %3984 = vmatpush3.bf16.msra.mxu1 %v4840_v24 }
 0x300   :  { %1016 = vst.msk [vmem:[#allocation2 + $0x9] sm:$0x1] %vm741_vm4, %v1012_v60  ;;  %3991 = vmatprep.subr.bf16.mxu1 %v4504_v12  ;;  %3990 = vmatpush3.bf16.msra.mxu0 %v4801_v14 }
 0x301   :  { %3997 = vmatprep.subr.bf16.mxu0 %v4504_v12 }
 0x302   :  { %3700 = vmatmul.mubr.msk.f32.vlgmr.msra.gmra.mrb[10].mxu1 %vm475_vm3, %v1017_v54 }
 0x303   :  { %3993 = vmatpush3.bf16.msra.mxu1 %v4797_v13  ;;  %3721 = vmatprep.mubr.msk.f32.mxu1 %vm4505_vm2, %v4506_v19 }
 0x304   :  { %3994 = vmatprep.subr.bf16.mxu1 %v4504_v12 }
 0x307   :  { %3996 = vmatpush3.bf16.msra.mxu1 %v4822_v20 }
 0x308   :  { %4003 = vmatprep.subr.bf16.mxu1 %v4504_v12 }
 0x3cd   :  { %v1086_v61 = vpop.f32.mrb[8].mxu1  ;;  %v1156_v62 = vpop.f32.mrb[10].mxu0 }
 0x3ce   :  { %v1231_v63 = vrot.slane %v1086_v61, 4  ;;  %v1241_v0 = vrot.slane %v1156_v62, 4  ;;  %v3679_v1 = vpop.f32.mrb[9].mxu1  ;;  %v3690_v2 = vpop.f32.mrb[11].mxu0 }
 0x3d0   :  { %v1233_v3 = vadd.f32 %v1231_v63, %v4868_v37  ;;  %v1243_v4 = vadd.f32 %v1241_v0, %v4871_v41 }
 0x3d2   :  { %v3384_v6 = vmul.f32 -1.442695, %v1233_v3  ;;  %v3385_v7 = vmul.f32 -1.442695, %v1243_v4 }
 0x3d4   :  { %4143 = vpow2.f32 %v3384_v6 }
 0x3d5   :  { %4145 = vpow2.f32 %v3385_v7  ;;  %v1226_v8 = vpop.f32.mrb[10].mxu1 }
 0x3d6   :  { %v3701_v10 = vpop.f32.mrb[11].mxu1  ;;  %v1227_v18 = vadd.f32 %v4874_v52, %v1226_v8 }
 0x3d8   :  { %v1251_v22 = vrot.slane %v1227_v18, 4 }
 0x3de   :  { %v4144_v11 = vpop.eup %4143 }
 0x3df   :  { %v4146_v15 = vpop.eup %4145  ;;  %v1237_v16 = vadd.f32 1.0, %v4144_v11 }
 0x3e0   :  { %v1247_v17 = vadd.f32 1.0, %v4146_v15 }
 0x3e1   :  { %4147 = vrcp.f32 %v1237_v16 }
 0x3e2   :  { %4149 = vrcp.f32 %v1247_v17 }
 0x3eb   :  { %v4148_v23 = vpop.eup %4147 }
 0x3ec   :  { %v4150_v26 = vpop.eup %4149  ;;  %v1253_v27 = vmul.f32 %v4148_v23, %v1251_v22 }
 0x3ed   :  { %v1260_v28 = vmul.f32 %v4150_v26, %v1258_v25  ;;  %v1256_v32 = vsub.f32 1.0, %v4150_v26 }
 0x3ee   :  { %v1254_v30 = vadd.f32 %v1253_v27, %v4877_v56 }
 0x3f0   :  { %4151 = vtanh.f32 %v1254_v30 }
 0x3fa   :  { %v4152_v33 = vpop.eup %4151 }
 0x3fb   :  { %v1257_v34 = vmul.f32 %v4152_v33, %v1256_v32 }
 0x3fd   :  { %v1261_v36 = vadd.f32 %v1260_v28, %v1257_v34 }
 0x3ff   :  { %v1263_v38 = vcombine.high %v1261_v36, %v1261_v36  ;;  %v1290_v39 = vrot.slane %v1261_v36, 4  ;;  %v1531_v2 = vrot.slane %v1261_v36, 6 }
 0x401   :  { %v1270_v40 = vrot.slane %v1263_v38, %v4880_v5  ;;  %3711 = vmatmul.mubr.msk.f32.vlgmr.msra.gmra.mrb[12].mxu0 %vm475_vm3, %v1290_v39  ;;  %3722 = vmatmul.mubr.msk.f32.vlgmr.msra.gmra.mrb[12].mxu1 %vm475_vm3, %v1290_v39 }
 0x402   :  { %3999 = vmatpush3.bf16.msra.mxu0 %v4826_v21  ;;  %3732 = vmatprep.mubr.msk.f32.mxu0 %vm4505_vm2, %v4506_v19 }
 0x403   :  { %v1271_v42 = vcombine.high %v1270_v40, %v1270_v40  ;;  %v1278_v43 = vrot.slane %v1270_v40, %v4880_v5  ;;  %4000 = vmatprep.subr.bf16.mxu0 %v4504_v12  ;;  %4005 = vmatpush3.bf16.msra.mxu1 %v4785_v9 }
 0x404   :  { %4006 = vmatprep.subr.bf16.mxu1 %v4504_v12  ;;  %3743 = vmatprep.mubr.msk.f32.mxu1 %vm4505_vm2, %v4506_v19 }
 0x405   :  { %v1285_v44 = vrot.slane %v1271_v42, %v4880_v5  ;;  %1288 = vst.msk [vmem:[#allocation2 + $0x2] sm:$0x1] %vm741_vm4, %v1278_v43 }
 0x406   :  { %4002 = vmatpush3.bf16.msra.mxu0 %v4840_v24 }
 0x407   :  { %1289 = vst.msk [vmem:[#allocation2 + $0xa] sm:$0x1] %vm741_vm4, %v1285_v44  ;;  %4009 = vmatprep.subr.bf16.mxu0 %v4504_v12  ;;  %4008 = vmatpush3.bf16.msra.mxu1 %v4801_v14 }
 0x408   :  { %4015 = vmatprep.subr.bf16.mxu1 %v4504_v12 }
 0x409   :  { %3733 = vmatmul.mubr.msk.f32.vlgmr.msra.gmra.mrb[14].mxu0 %vm475_vm3, %v1290_v39 }
 0x40a   :  { %4011 = vmatpush3.bf16.msra.mxu0 %v4797_v13  ;;  %3754 = vmatprep.mubr.msk.f32.mxu0 %vm4505_vm2, %v4506_v19 }
 0x40b   :  { %4012 = vmatprep.subr.bf16.mxu0 %v4504_v12 }
 0x40e   :  { %4014 = vmatpush3.bf16.msra.mxu0 %v4822_v20 }
 0x40f   :  { %4021 = vmatprep.subr.bf16.mxu0 %v4504_v12 }
 0x4d4   :  { %v1359_v45 = vpop.f32.mrb[12].mxu0  ;;  %v1429_v46 = vpop.f32.mrb[12].mxu1 }
 0x4d5   :  { %v1504_v47 = vrot.slane %v1359_v45, 2  ;;  %v1514_v48 = vrot.slane %v1429_v46, 2  ;;  %v3712_v49 = vpop.f32.mrb[13].mxu0  ;;  %v3723_v50 = vpop.f32.mrb[13].mxu1 }
 0x4d7   :  { %v1506_v51 = vadd.f32 %v1504_v47, %v4868_v37  ;;  %v1516_v53 = vadd.f32 %v1514_v48, %v4871_v41 }
 0x4d9   :  { %v3389_v54 = vmul.f32 -1.442695, %v1506_v51  ;;  %v3390_v55 = vmul.f32 -1.442695, %v1516_v53 }
 0x4db   :  { %4153 = vpow2.f32 %v3389_v54 }
 0x4dc   :  { %4155 = vpow2.f32 %v3390_v55  ;;  %v1499_v57 = vpop.f32.mrb[14].mxu0 }
 0x4dd   :  { %v3734_v58 = vpop.f32.mrb[15].mxu0  ;;  %v1500_v63 = vadd.f32 %v4874_v52, %v1499_v57 }
 0x4df   :  { %v1524_v0 = vrot.slane %v1500_v63, 2 }
 0x4e5   :  { %v4154_v59 = vpop.eup %4153 }
 0x4e6   :  { %v4156_v60 = vpop.eup %4155  ;;  %v1510_v61 = vadd.f32 1.0, %v4154_v59 }
 0x4e7   :  { %v1520_v62 = vadd.f32 1.0, %v4156_v60 }
 0x4e8   :  { %4157 = vrcp.f32 %v1510_v61 }
 0x4e9   :  { %4159 = vrcp.f32 %v1520_v62 }
 0x4f2   :  { %v4158_v1 = vpop.eup %4157 }
 0x4f3   :  { %v4160_v37 = vpop.eup %4159  ;;  %v1526_v3 = vmul.f32 %v4158_v1, %v1524_v0 }
 0x4f4   :  { %v1533_v41 = vmul.f32 %v4160_v37, %v1531_v2  ;;  %v1529_v6 = vsub.f32 1.0, %v4160_v37 }
 0x4f5   :  { %v1527_v4 = vadd.f32 %v1526_v3, %v4877_v56 }
 0x4f7   :  { %4161 = vtanh.f32 %v1527_v4 }
 0x501   :  { %v4162_v7 = vpop.eup %4161 }
 0x502   :  { %v1530_v8 = vmul.f32 %v4162_v7, %v1529_v6 }
 0x504   :  { %v1534_v10 = vadd.f32 %v1533_v41, %v1530_v8 }
 0x506   :  { %v1536_v11 = vcombine.high %v1534_v10, %v1534_v10  ;;  %v1565_v15 = vrot.slane %v1534_v10, 6 }
 0x508   :  { %v1543_v16 = vrot.slane %v1536_v11, %v4880_v5  ;;  %3744 = vmatmul.mubr.msk.f32.vlgmr.msra.gmra.mrb[14].mxu1 %vm475_vm3, %v1565_v15  ;;  %3755 = vmatmul.mubr.msk.f32.vlgmr.msra.gmra.mrb[16].mxu0 %vm475_vm3, %v1565_v15 }
 0x509   :  { %4017 = vmatpush3.bf16.msra.mxu1 %v4826_v21  ;;  %3765 = vmatprep.mubr.msk.f32.mxu1 %vm4505_vm2, %v4506_v19 }
 0x50a   :  { %v1544_v17 = vcombine.high %v1543_v16, %v1543_v16  ;;  %v1551_v56 = vrot.slane %v1543_v16, %v4880_v5  ;;  %4018 = vmatprep.subr.bf16.mxu1 %v4504_v12  ;;  %4023 = vmatpush3.bf16.msra.mxu0 %v4785_v9 }
 0x50b   :  { %4024 = vmatprep.subr.bf16.mxu0 %v4504_v12  ;;  %3776 = vmatprep.mubr.msk.f32.mxu0 %vm4505_vm2, %v4506_v19 }
 0x50c   :  { %v1558_v18 = vrot.slane %v1544_v17, %v4880_v5  ;;  %v1559_v22 = vcombine.high %v1551_v56, %v1551_v56 }
 0x50d   :  { %4020 = vmatpush3.bf16.msra.mxu1 %v4840_v24 }
 0x50e   :  { %v1560_v23 = vcombine.high %v1558_v18, %v1558_v18  ;;  %1563 = vst.msk [vmem:[#allocation2 + $0x3] sm:$0x1] %vm741_vm4, %v1559_v22  ;;  %4027 = vmatprep.subr.bf16.mxu1 %v4504_v12  ;;  %4026 = vmatpush3.bf16.msra.mxu0 %v4801_v14 }
 0x50f   :  { %4033 = vmatprep.subr.bf16.mxu0 %v4504_v12 }
 0x510   :  { %1564 = vst.msk [vmem:[#allocation2 + $0xb] sm:$0x1] %vm741_vm4, %v1560_v23  ;;  %3766 = vmatmul.mubr.msk.f32.vlgmr.msra.gmra.mrb[16].mxu1 %vm475_vm3, %v1565_v15 }
 0x511   :  { %4029 = vmatpush3.bf16.msra.mxu1 %v4797_v13  ;;  %3787 = vmatprep.mubr.msk.f32.mxu1 %vm4505_vm2, %v4506_v19 }
 0x512   :  { %4030 = vmatprep.subr.bf16.mxu1 %v4504_v12 }
 0x515   :  { %4032 = vmatpush3.bf16.msra.mxu1 %v4822_v20 }
 0x516   :  { %4039 = vmatprep.subr.bf16.mxu1 %v4504_v12 }
 0x5db   :  { %v1634_v25 = vpop.f32.mrb[14].mxu1  ;;  %v1704_v26 = vpop.f32.mrb[16].mxu0 }
 0x5dc   :  { %v1778_v27 = vadd.f32 %v1634_v25, %v4864_v31  ;;  %v3745_v28 = vpop.f32.mrb[15].mxu1  ;;  %v3756_v30 = vpop.f32.mrb[17].mxu0  ;;  %v1785_v33 = vadd.f32 %v1704_v26, %v4862_v29 }
 0x5de   :  { %v3394_v32 = vmul.f32 -1.442695, %v1778_v27  ;;  %v3395_v34 = vmul.f32 -1.442695, %v1785_v33 }
 0x5e0   :  { %4163 = vpow2.f32 %v3394_v32 }
 0x5e1   :  { %4165 = vpow2.f32 %v3395_v34 }
 0x5e3   :  { %v1774_v36 = vpop.f32.mrb[16].mxu1 }
 0x5e4   :  { %v3767_v38 = vpop.f32.mrb[17].mxu1  ;;  %v1775_v44 = vadd.f32 %v4874_v52, %v1774_v36 }
 0x5ea   :  { %v4164_v39 = vpop.eup %4163 }
 0x5eb   :  { %v1782_v40 = vadd.f32 1.0, %v4164_v39  ;;  %v4166_v42 = vpop.eup %4165 }
 0x5ec   :  { %v1789_v43 = vadd.f32 1.0, %v4166_v42 }
 0x5ed   :  { %4167 = vrcp.f32 %v1782_v40 }
 0x5ee   :  { %4169 = vrcp.f32 %v1789_v43 }
 0x5f7   :  { %v4168_v45 = vpop.eup %4167 }
 0x5f8   :  { %v1792_v46 = vmul.f32 %v4168_v45, %v1775_v44  ;;  %v4170_v48 = vpop.eup %4169 }
 0x5f9   :  { %v1795_v49 = vsub.f32 1.0, %v4170_v48  ;;  %v1798_v53 = vmul.f32 %v4170_v48, %v1565_v15 }
 0x5fa   :  { %v1793_v47 = vadd.f32 %v1792_v46, %v4866_v35 }
 0x5fc   :  { %4171 = vtanh.f32 %v1793_v47 }
 0x606   :  { %v4172_v50 = vpop.eup %4171 }
 0x607   :  { %v1796_v51 = vmul.f32 %v4172_v50, %v1795_v49 }
 0x609   :  { %v1799_v54 = vadd.f32 %v1798_v53, %v1796_v51 }
 0x60b   :  { %v1807_v55 = vrot.slane %v1799_v54, %v4880_v5  ;;  %3777 = vmatmul.mubr.msk.f32.vlgmr.msra.gmra.mrb[18].mxu0 %vm475_vm3, %v1799_v54  ;;  %3788 = vmatmul.mubr.msk.f32.vlgmr.msra.gmra.mrb[18].mxu1 %vm475_vm3, %v1799_v54  ;;  %v2067_v56 = vrot.slane %v1799_v54, 6 }
 0x60c   :  { %4035 = vmatpush3.bf16.msra.mxu0 %v4826_v21  ;;  %3798 = vmatprep.mubr.msk.f32.mxu0 %vm4505_vm2, %v4506_v19 }
 0x60d   :  { %v1808_v57 = vcombine.high %v1807_v55, %v1807_v55  ;;  %v1815_v58 = vrot.slane %v1807_v55, %v4880_v5  ;;  %4036 = vmatprep.subr.bf16.mxu0 %v4504_v12  ;;  %4041 = vmatpush3.bf16.msra.mxu1 %v4785_v9 }
 0x60e   :  { %4042 = vmatprep.subr.bf16.mxu1 %v4504_v12  ;;  %3809 = vmatprep.mubr.msk.f32.mxu1 %vm4505_vm2, %v4506_v19 }
 0x60f   :  { %v1822_v59 = vrot.slane %v1808_v57, %v4880_v5  ;;  %1825 = vst.msk [vmem:[#allocation2 + $0x4] sm:$0x1] %vm741_vm4, %v1815_v58 }
 0x610   :  { %4038 = vmatpush3.bf16.msra.mxu0 %v4840_v24 }
 0x611   :  { %1826 = vst.msk [vmem:[#allocation2 + $0xc] sm:$0x1] %vm741_vm4, %v1822_v59  ;;  %4045 = vmatprep.subr.bf16.mxu0 %v4504_v12  ;;  %4044 = vmatpush3.bf16.msra.mxu1 %v4801_v14 }
 0x612   :  { %4051 = vmatprep.subr.bf16.mxu1 %v4504_v12 }
 0x613   :  { %3799 = vmatmul.mubr.msk.f32.vlgmr.msra.gmra.mrb[20].mxu0 %vm475_vm3, %v1799_v54 }
 0x614   :  { %4047 = vmatpush3.bf16.msra.mxu0 %v4797_v13  ;;  %3820 = vmatprep.mubr.msk.f32.mxu0 %vm4505_vm2, %v4506_v19 }
 0x615   :  { %4048 = vmatprep.subr.bf16.mxu0 %v4504_v12 }
 0x618   :  { %4050 = vmatpush3.bf16.msra.mxu0 %v4822_v20 }
 0x619   :  { %4057 = vmatprep.subr.bf16.mxu0 %v4504_v12 }
 0x6de   :  { %v1895_v60 = vpop.f32.mrb[18].mxu0  ;;  %v1965_v61 = vpop.f32.mrb[18].mxu1 }
 0x6df   :  { %v2040_v62 = vrot.slane %v1895_v60, 6  ;;  %v2050_v63 = vrot.slane %v1965_v61, 6  ;;  %v3778_v0 = vpop.f32.mrb[19].mxu0  ;;  %v3789_v1 = vpop.f32.mrb[19].mxu1 }
 0x6e1   :  { %v2042_v2 = vadd.f32 %v2040_v62, %v4864_v31  ;;  %v2052_v37 = vadd.f32 %v2050_v63, %v4862_v29 }
 0x6e3   :  { %v3399_v3 = vmul.f32 -1.442695, %v2042_v2  ;;  %v3400_v41 = vmul.f32 -1.442695, %v2052_v37 }
 0x6e5   :  { %4173 = vpow2.f32 %v3399_v3 }
 0x6e6   :  { %4175 = vpow2.f32 %v3400_v41  ;;  %v2035_v4 = vpop.f32.mrb[20].mxu0 }
 0x6e7   :  { %v3800_v6 = vpop.f32.mrb[21].mxu0  ;;  %v2036_v15 = vadd.f32 %v4874_v52, %v2035_v4 }
 0x6e9   :  { %v2060_v16 = vrot.slane %v2036_v15, 6  ;;  %v2742_v15 = vld [vmem:[#allocation15] sm:$0xff] }
 0x6ef   :  { %v4174_v7 = vpop.eup %4173 }
 0x6f0   :  { %v4176_v8 = vpop.eup %4175  ;;  %v2046_v10 = vadd.f32 1.0, %v4174_v7 }
 0x6f1   :  { %v2056_v11 = vadd.f32 1.0, %v4176_v8 }
 0x6f2   :  { %4177 = vrcp.f32 %v2046_v10  ;;  %v2651_v10 = vld [vmem:[%s5177_s11 + $0x8] sm:$0xff] }
 0x6f3   :  { %4179 = vrcp.f32 %v2056_v11 }
 0x6fc   :  { %v4178_v17 = vpop.eup %4177 }
 0x6fd   :  { %v4180_v18 = vpop.eup %4179  ;;  %v2062_v22 = vmul.f32 %v4178_v17, %v2060_v16  ;;  %v2743_v16 = vld [vmem:[#allocation15 + $0x8] sm:$0xff] }
 0x6fe   :  { %v2069_v23 = vmul.f32 %v4180_v18, %v2067_v56  ;;  %v2065_v26 = vsub.f32 1.0, %v4180_v18  ;;  %v4083_v17 = vpack.c.bf16 %v2743_v16, %v2742_v15  ;;  %v2653_v56 = vld [vmem:[%s5177_s11 + $0x18] sm:$0xff]  ;;  %v2744_v18 = vld [vmem:[#allocation15 + $0x10] sm:$0xff] }
 0x6ff   :  { %v2063_v25 = vadd.f32 %v2062_v22, %v4866_v35 }
 0x701   :  { %4181 = vtanh.f32 %v2063_v25 }
 0x70b   :  { %v4182_v27 = vpop.eup %4181 }
 0x70c   :  { %v2066_v28 = vmul.f32 %v4182_v27, %v2065_v26  ;;  %v2828_v26 = vld [vmem:[#allocation17] sm:$0xff]  ;;  %v2829_v27 = vld [vmem:[#allocation17 + $0x8] sm:$0xff] }
 0x70e   :  { %v2070_v30 = vadd.f32 %v2069_v23, %v2066_v28  ;;  %v2745_v23 = vld [vmem:[#allocation15 + $0x18] sm:$0xff]  ;;  %v4091_v28 = vpack.c.bf16 %v2829_v27, %v2828_v26 }
 0x70f   :  { %v4087_v25 = vpack.c.bf16 %v2745_v23, %v2744_v18 }
 0x710   :  { %v2078_v32 = vrot.slane %v2070_v30, %v4880_v5  ;;  %v2100_v33 = vrot.slane %v2070_v30, 2  ;;  %v2341_v59 = vrot.slane %v2070_v30, 6 }
 0x712   :  { %v2079_v34 = vcombine.high %v2078_v32, %v2078_v32  ;;  %v2086_v36 = vrot.slane %v2078_v32, %v4880_v5  ;;  %3810 = vmatmul.mubr.msk.f32.vlgmr.msra.gmra.mrb[20].mxu1 %vm475_vm3, %v2100_v33  ;;  %3821 = vmatmul.mubr.msk.f32.vlgmr.msra.gmra.mrb[22].mxu0 %vm475_vm3, %v2100_v33 }
 0x713   :  { %4053 = vmatpush3.bf16.msra.mxu1 %v4826_v21  ;;  %3831 = vmatprep.mubr.msk.f32.mxu1 %vm4505_vm2, %v4506_v19 }
 0x714   :  { %v2093_v38 = vrot.slane %v2079_v34, %v4880_v5  ;;  %v2094_v39 = vcombine.high %v2086_v36, %v2086_v36  ;;  %4054 = vmatprep.subr.bf16.mxu1 %v4504_v12  ;;  %4059 = vmatpush3.bf16.msra.mxu0 %v4785_v9 }
 0x715   :  { %4060 = vmatprep.subr.bf16.mxu0 %v4504_v12  ;;  %3842 = vmatprep.mubr.msk.f32.mxu0 %vm4505_vm2, %v4506_v19 }
 0x716   :  { %v2095_v40 = vcombine.high %v2093_v38, %v2093_v38  ;;  %2098 = vst.msk [vmem:[#allocation2 + $0x5] sm:$0x1] %vm741_vm4, %v2094_v39 }
 0x717   :  { %4056 = vmatpush3.bf16.msra.mxu1 %v4840_v24 }
 0x718   :  { %2099 = vst.msk [vmem:[#allocation2 + $0xd] sm:$0x1] %vm741_vm4, %v2095_v40  ;;  %4063 = vmatprep.subr.bf16.mxu1 %v4504_v12  ;;  %4062 = vmatpush3.bf16.msra.mxu0 %v4801_v14 }
 0x719   :  { %4069 = vmatprep.subr.bf16.mxu0 %v4504_v12 }
 0x71a   :  { %3832 = vmatmul.mubr.msk.f32.vlgmr.msra.gmra.mrb[22].mxu1 %vm475_vm3, %v2100_v33 }
 0x71b   :  { %4065 = vmatpush3.bf16.msra.mxu1 %v4797_v13  ;;  %3853 = vmatprep.mubr.msk.f32.mxu1 %vm4505_vm2, %v4506_v19 }
 0x71c   :  { %4066 = vmatprep.subr.bf16.mxu1 %v4504_v12 }
 0x71f   :  { %4068 = vmatpush3.bf16.msra.mxu1 %v4822_v20 }
 0x7e5   :  { %v2169_v9 = vpop.f32.mrb[20].mxu1  ;;  %v2239_v42 = vpop.f32.mrb[22].mxu0 }
 0x7e6   :  { %v2314_v43 = vrot.slane %v2169_v9, 4  ;;  %v2324_v44 = vrot.slane %v2239_v42, 4  ;;  %v3811_v45 = vpop.f32.mrb[21].mxu1  ;;  %v3822_v46 = vpop.f32.mrb[23].mxu0 }
 0x7e8   :  { %v2316_v14 = vadd.f32 %v2314_v43, %v4864_v31  ;;  %v2326_v47 = vadd.f32 %v2324_v44, %v4862_v29 }
 0x7ea   :  { %v3404_v48 = vmul.f32 -1.442695, %v2316_v14  ;;  %v3405_v49 = vmul.f32 -1.442695, %v2326_v47 }
 0x7ec   :  { %4183 = vpow2.f32 %v3404_v48 }
 0x7ed   :  { %4185 = vpow2.f32 %v3405_v49  ;;  %v2309_v13 = vpop.f32.mrb[22].mxu1 }
 0x7ee   :  { %v3833_v50 = vpop.f32.mrb[23].mxu1  ;;  %v2310_v55 = vadd.f32 %v4874_v52, %v2309_v13 }
 0x7f0   :  { %v2334_v57 = vrot.slane %v2310_v55, 4 }
 0x7f6   :  { %v4184_v51 = vpop.eup %4183 }
 0x7f7   :  { %v4186_v53 = vpop.eup %4185  ;;  %v2320_v54 = vadd.f32 1.0, %v4184_v51 }
 0x7f8   :  { %v2330_v20 = vadd.f32 1.0, %v4186_v53 }
 0x7f9   :  { %4187 = vrcp.f32 %v2320_v54 }
 0x7fa   :  { %4189 = vrcp.f32 %v2330_v20 }
 0x803   :  { %v4188_v58 = vpop.eup %4187 }
 0x804   :  { %v4190_v60 = vpop.eup %4189  ;;  %v2336_v61 = vmul.f32 %v4188_v58, %v2334_v57 }
 0x805   :  { %v2343_v62 = vmul.f32 %v4190_v60, %v2341_v59  ;;  %v2339_v0 = vsub.f32 1.0, %v4190_v60 }
 0x806   :  { %v2337_v63 = vadd.f32 %v2336_v61, %v4866_v35 }
 0x808   :  { %4191 = vtanh.f32 %v2337_v63 }
 0x812   :  { %v4192_v1 = vpop.eup %4191 }
 0x813   :  { %v2340_v2 = vmul.f32 %v4192_v1, %v2339_v0  ;;  %v2831_v0 = vld [vmem:[#allocation17 + $0x18] sm:$0xff] }
 0x815   :  { %v5061_v37 = vadd.f32 %v2343_v62, %v2340_v2 }
 0x817   :  { %v2346_v3 = vcombine.high %v5061_v37, %v5061_v37  ;;  %v2373_v41 = vrot.slane %v5061_v37, 4 }
 0x819   :  { %v2353_v4 = vrot.slane %v2346_v3, %v4880_v5  ;;  %3843 = vmatmul.mubr.msk.f32.vlgmr.msra.gmra.mrb[24].mxu0 %vm475_vm3, %v2373_v41  ;;  %3854 = vmatmul.mubr.msk.f32.vlgmr.msra.gmra.mrb[24].mxu1 %vm475_vm3, %v2373_v41 }
 0x81a   :  { %4071 = vmatpush3.bf16.msra.mxu0 %v4826_v21  ;;  %3864 = vmatprep.mubr.msk.f32.mxu0 %vm4505_vm2, %v4506_v19  ;;  %v2650_v21 = vld [vmem:[%s5177_s11] sm:$0xff] }
 0x81b   :  { %v2354_v6 = vcombine.high %v2353_v4, %v2353_v4  ;;  %v2361_v7 = vrot.slane %v2353_v4, %v4880_v5  ;;  %4072 = vmatprep.subr.bf16.mxu0 %v4504_v12  ;;  %v4075_v11 = vpack.c.bf16 %v2651_v10, %v2650_v21 }
 0x81d   :  { %v2368_v8 = vrot.slane %v2354_v6, %v4880_v5  ;;  %2371 = vst.msk [vmem:[#allocation2 + $0x6] sm:$0x1] %vm741_vm4, %v2361_v7  ;;  %4076 = vmatprep.subr.bf16.mxu1 %v4075_v11  ;;  %v3411_v7 = vld [vmem:[%s5180_s14] ss:$0 sm:$0xff] }
 0x81e   :  { %4074 = vmatpush3.bf16.msra.mxu0 %v4840_v24  ;;  %v2652_v24 = vld [vmem:[%s5177_s11 + $0x10] sm:$0xff]  ;;  %4078 = vmatpush3.bf16.msra.mxu1 %v4075_v11  ;;  %v3417_v11 = vld [vmem:[%s5182_s16] ss:$0 sm:$0xff] }
 0x81f   :  { %2372 = vst.msk [vmem:[#allocation2 + $0xe] sm:$0x1] %vm741_vm4, %v2368_v8  ;;  %4084 = vmatprep.subr.bf16.mxu0 %v4083_v17  ;;  %v4079_v22 = vpack.c.bf16 %v2653_v56, %v2652_v24 }
 0x821   :  { %3865 = vmatmul.mubr.msk.f32.vlgmr.msra.gmra.mrb[26].mxu0 %vm475_vm3, %v2373_v41  ;;  %4080 = vmatprep.subr.bf16.mxu1 %v4079_v22 }
 0x822   :  { %4086 = vmatpush3.bf16.msra.mxu0 %v4083_v17  ;;  %4082 = vmatpush3.bf16.msra.mxu1 %v4079_v22 }
 0x823   :  { %4088 = vmatprep.subr.bf16.mxu0 %v4087_v25  ;;  %4092 = vmatprep.subr.bf16.mxu1 %v4091_v28 }
 0x826   :  { %4090 = vmatpush3.bf16.msra.mxu0 %v4087_v25 }
 0x827   :  { %3900 = vmatprep.subr.mxu0 %v4506_v19 }
 0x8ec   :  { %v2442_v30 = vpop.f32.mrb[24].mxu0  ;;  %v2512_v32 = vpop.f32.mrb[24].mxu1 }
 0x8ed   :  { %v2587_v33 = vrot.slane %v2442_v30, 2  ;;  %v2597_v34 = vrot.slane %v2512_v32, 2  ;;  %v3844_v36 = vpop.f32.mrb[25].mxu0  ;;  %v3855_v38 = vpop.f32.mrb[25].mxu1 }
 0x8ef   :  { %v2589_v39 = vadd.f32 %v2587_v33, %v4864_v31  ;;  %v2599_v40 = vadd.f32 %v2597_v34, %v4862_v29  ;;  %v2614_v31 = vrot.slane %v5061_v37, 6 }
 0x8f1   :  { %v3409_v9 = vmul.f32 -1.442695, %v2589_v39  ;;  %v3410_v42 = vmul.f32 -1.442695, %v2599_v40 }
 0x8f3   :  { %4193 = vpow2.f32 %v3409_v9 }
 0x8f4   :  { %4195 = vpow2.f32 %v3410_v42  ;;  %v2582_v43 = vpop.f32.mrb[26].mxu0 }
 0x8f5   :  { %v3866_v44 = vpop.f32.mrb[27].mxu0  ;;  %v2583_v48 = vadd.f32 %v4874_v52, %v2582_v43 }
 0x8f7   :  { %v2607_v49 = vrot.slane %v2583_v48, 2 }
 0x8fd   :  { %v4194_v45 = vpop.eup %4193 }
 0x8fe   :  { %v4196_v46 = vpop.eup %4195  ;;  %v2593_v14 = vadd.f32 1.0, %v4194_v45 }
 0x8ff   :  { %v2603_v47 = vadd.f32 1.0, %v4196_v46 }
 0x900   :  { %4197 = vrcp.f32 %v2593_v14 }
 0x901   :  { %4199 = vrcp.f32 %v2603_v47 }
 0x90a   :  { %v4198_v13 = vpop.eup %4197 }
 0x90b   :  { %v4200_v50 = vpop.eup %4199  ;;  %v2609_v29 = vmul.f32 %v4198_v13, %v2607_v49  ;;  %v3251_v49 = vld [vmem:[%s5183_s17] sm:$0xff]  ;;  %v3252_v13 = vld [vmem:[%s5183_s17 + $0x8] sm:$0xff] }
 0x90c   :  { %v2616_v51 = vmul.f32 %v4200_v50, %v2614_v31  ;;  %v2612_v54 = vsub.f32 1.0, %v4200_v50  ;;  %v4100_v31 = vpack.c.bf16 %v3252_v13, %v3251_v49  ;;  %v3253_v50 = vld [vmem:[%s5183_s17 + $0x10] sm:$0xff] }
 0x90d   :  { %v2610_v53 = vadd.f32 %v2609_v29, %v4866_v35  ;;  %v2830_v35 = vld [vmem:[#allocation17 + $0x10] sm:$0xff] }
 0x90e   :  { %v4095_v2 = vpack.c.bf16 %v2831_v0, %v2830_v35 }
 0x90f   :  { %4201 = vtanh.f32 %v2610_v53 }
 0x919   :  { %v4202_v20 = vpop.eup %4201 }
 0x91a   :  { %v2613_v55 = vmul.f32 %v4202_v20, %v2612_v54 }
 0x91c   :  { %v2617_v57 = vadd.f32 %v2616_v51, %v2613_v55 }
 0x91e   :  { %v2619_v58 = vcombine.high %v2617_v57, %v2617_v57 }
 0x920   :  { %v2626_v59 = vrot.slane %v2619_v58, %v4880_v5 }
 0x922   :  { %v2627_v60 = vcombine.high %v2626_v59, %v2626_v59  ;;  %v2634_v52 = vrot.slane %v2626_v59, %v4880_v5 }
 0x924   :  { %v2641_v61 = vrot.slane %v2627_v60, %v4880_v5  ;;  %v2642_v62 = vcombine.high %v2634_v52, %v2634_v52  ;;  %v3414_v5 = vld [vmem:[#allocation18] ss:$0 sm:$0xff] }
 0x926   :  { %v2643_v63 = vcombine.high %v2641_v61, %v2641_v61  ;;  %2646 = vst.msk [vmem:[#allocation2 + $0x7] sm:$0x1] %vm741_vm4, %v2642_v62 }
 0x928   :  { %2647 = vst.msk [vmem:[#allocation2 + $0xf] sm:$0x1] %vm741_vm4, %v2643_v63 }
 0x92d   :  { %v2648_v1 = vld [vmem:[#allocation2] sm:$0xff] }
 0x92e   :  { %3875 = vmatprep.mubr.msk.f32.mxu1 %vm475_vm3, %v2648_v1  ;;  %3886 = vmatprep.mubr.msk.f32.mxu0 %vm475_vm3, %v2648_v1 }
 0x92f   :  { %v2649_v37 = vld [vmem:[#allocation2 + $0x8] sm:$0xff] }
 0x930   :  { %3876 = vmatmul.mubr.msk.f32.vlgmr.msra.gmra.mrb[26].mxu1 %vm475_vm3, %v2649_v37  ;;  %3887 = vmatmul.mubr.msk.f32.vlgmr.msra.gmra.mrb[28].mxu0 %vm475_vm3, %v2649_v37 }
 0x931   :  { %4094 = vmatpush3.bf16.msra.mxu1 %v4091_v28  ;;  %3897 = vmatprep.mubr.msk.f32.mxu1 %vm475_vm3, %v2648_v1 }
 0x932   :  { %4096 = vmatprep.subr.bf16.mxu1 %v4095_v2  ;;  %3902 = vmatprep.mubr.msk.f32.mxu0 %vm4505_vm2, %v4506_v19 }
 0x935   :  { %4098 = vmatpush3.bf16.msra.mxu1 %v4095_v2 }
 0x936   :  { %3910 = vmatprep.subr.mxu1 %v4506_v19 }
 0x938   :  { %3898 = vmatmul.mubr.msk.f32.vlgmr.msra.gmra.mrb[28].mxu1 %vm475_vm3, %v2649_v37 }
 0x939   :  { %3912 = vmatprep.mubr.msk.f32.mxu1 %vm4505_vm2, %v4506_v19 }
 0xa03   :  { %v3877_v3 = vpop.f32.mrb[26].mxu1  ;;  %v3888_v41 = vpop.f32.mrb[28].mxu0 }
 0xa04   :  { %v2733_v4 = vpop.f32.mrb[27].mxu1  ;;  %v2819_v6 = vpop.f32.mrb[29].mxu0  ;;  %v2825_v10 = vadd.f32 %v3888_v41, %v3414_v5  ;;  %v2739_v16 = vadd.f32 %v3877_v3, %v3411_v7 }
 0xa05   :  { %v2820_v8 = vadd.f32 %v3414_v5, %v2819_v6  ;;  %v2734_v21 = vadd.f32 %v3411_v7, %v2733_v4  ;;  %v3426_v5 = vld [vmem:[#allocation20] ss:$0 sm:$0xff] }
 0xa07   :  { %3901 = vmatpush3.xpose.msk.msra.mxu0 %vm475_vm3, %v2820_v8 }
 0xa08   :  { %3905 = vmatprep.subr.mxu0 %v4506_v19 }
 0xa0a   :  { %3903 = vmatmul.mubr.msk.f32.vlgmr.msra.gmra.mrb[30].mxu0 %vm475_vm3, %v2734_v21 }
 0xa0b   :  { %v3899_v15 = vpop.f32.mrb[28].mxu1  ;;  %3906 = vmatpush3.xpose.msk.msra.mxu0 %vm475_vm3, %v2825_v10  ;;  %3907 = vmatprep.mubr.msk.f32.mxu0 %vm4505_vm2, %v4506_v19 }
 0xa0c   :  { %v2905_v17 = vpop.f32.mrb[29].mxu1  ;;  %3915 = vmatprep.subr.mxu0 %v4506_v19  ;;  %v2911_v24 = vadd.f32 %v3899_v15, %v3417_v11 }
 0xa0d   :  { %v2906_v56 = vadd.f32 %v3417_v11, %v2905_v17 }
 0xa0e   :  { %3908 = vmatmul.mubr.msk.f32.vlgmr.msra.gmra.mrb[32].mxu0 %vm475_vm3, %v2739_v16 }
 0xa0f   :  { %3911 = vmatpush3.msra.mxu1 %v2906_v56  ;;  %3916 = vmatpush3.msra.mxu0 %v2911_v24 }
 0xa10   :  { %3917 = vmatprep.mubr.msk.f32.mxu0 %vm4505_vm2, %v4506_v19  ;;  %4099 = vmatprep.subr.bf16.mxu1 %v4504_v12 }
 0xadd   :  { %v2986_v18 = vpop.f32.mrb[30].mxu0 }
 0xade   :  { %v3066_v22 = vmul.f32 0.17677669, %v2986_v18  ;;  %v3904_v23 = vpop.f32.mrb[31].mxu0 }
 0xae0   :  { %v3069_v25 = vsel %vm3068_vm5, %v3066_v22, -inf }
 0xae1   :  { %3070 = vmax.xlane.f32.xlu0 %v3069_v25  ;;  %v3062_v26 = vpop.f32.mrb[32].mxu0 }
 0xae2   :  { %v3067_v27 = vmul.f32 0.17677669, %v3062_v26  ;;  %v3909_v28 = vpop.f32.mrb[33].mxu0 }
 0xae4   :  { %v3072_v30 = vsel %vm3068_vm5, %v3067_v27, -inf }
 0xae5   :  { %3073 = vmax.xlane.f32.xlu0 %v3072_v30 }
 0xb6e   :  { %v3071_v32 = vpop.xlane.xlu0 %3070 }
 0xb6f   :  { %v3075_v33 = vsub.f32 %v3066_v22, %v3071_v32 }
 0xb71   :  { %v3077_v34 = vmul.f32 1.442695, %v3075_v33 }
 0xb72   :  { %v3074_v36 = vpop.xlane.xlu0 %3073 }
 0xb73   :  { %4203 = vpow2.f32 %v3077_v34  ;;  %v3076_v38 = vsub.f32 %v3067_v27, %v3074_v36 }
 0xb75   :  { %v3079_v39 = vmul.f32 1.442695, %v3076_v38 }
 0xb77   :  { %4205 = vpow2.f32 %v3079_v39 }
 0xb7d   :  { %v4204_v40 = vpop.eup %4203 }
 0xb7e   :  { %v3081_v9 = vsel %vm3068_vm5, %v4204_v40, 0.0 }
 0xb7f   :  { %3082 = vadd.xlane.f32.xlu1 %v3081_v9 }
 0xb81   :  { %v4206_v42 = vpop.eup %4205 }
 0xb82   :  { %v3084_v43 = vsel %vm3068_vm5, %v4206_v42, 0.0 }
 0xb83   :  { %3085 = vadd.xlane.f32.xlu1 %v3084_v43 }
 0xc0c   :  { %v3083_v44 = vpop.xlane.xlu1 %3082 }
 0xc0d   :  { %4207 = vrcp.f32 %v3083_v44 }
 0xc10   :  { %v3086_v45 = vpop.xlane.xlu1 %3085 }
 0xc11   :  { %4209 = vrcp.f32 %v3086_v45 }
 0xc17   :  { %v4208_v46 = vpop.eup %4207 }
 0xc18   :  { %v3089_v14 = vmul.f32 %v4208_v46, %v4204_v40 }
 0xc1a   :  { %3913 = vmatmul.mubr.msk.f32.vlgmr.msra.gmra.mrb[30].mxu1 %vm3068_vm5, %v3089_v14 }
 0xc1b   :  { %v4210_v47 = vpop.eup %4209  ;;  %3928 = vmatprep.mubr.msk.f32.mxu1 %vm4505_vm2, %v4506_v19  ;;  %4101 = vmatpush3.bf16.msra.mxu1 %v4100_v31  ;;  %v3254_v19 = vld [vmem:[%s5183_s17 + $0x18] sm:$0xff]  ;;  %s4508_s17 = smov [#allocation21]  }
 0xc1c   :  { %v3090_v48 = vmul.f32 %v4210_v47, %v4206_v42  ;;  %4102 = vmatprep.subr.bf16.mxu1 %v4504_v12  ;;  %v4103_v29 = vpack.c.bf16 %v3254_v19, %v3253_v50  ;;  %s3347_s12 = sshll.u32 %s4508_s17, 4  ;;  %s3348_s12 = int_to_ptr.vmem [resolvable:$true] %s3347_s12 }
 0xc1d   :  { %s4455_s13 = scalar_lea.vmem %s3348_s12, 32  ;;  %p4460_p5 = scmp.lt.s32.totalorder %s3348_s12, %s3348_s12 }
 0xc1e   :  { %3918 = vmatmul.mubr.msk.f32.vlgmr.msra.gmra.mrb[34].mxu0 %vm3068_vm5, %v3090_v48  ;;  %p4456_p4 = scmp.ne.s32.totalorder %s3348_s12, %s4455_s13  ;;  %p4461_p6 = scmp.lt.s32.totalorder %s4455_s13, %s4455_s13 }
 0xc1f   :  { %4104 = vmatpush3.bf16.msra.mxu1 %v4103_v29 }
 0xc20   :  { %p4462_p7 = por %p4461_p6, %p4460_p5 }
 0xc22   :  { %p4463_p8 = pnand %p4462_p7, %p4456_p4 }
 0xced   :  { %v3160_v51 = vpop.f32.mrb[30].mxu1 }
 0xcee   :  { %v3237_v53 = vsel %vm475_vm3, %v3160_v51, 0.0  ;;  %v3914_v54 = vpop.f32.mrb[31].mxu1 }
 0xcef   :  { %v3238_v20 = vrot.slane %v3237_v53, 4 }
 0xcf1   :  { %v3239_v55 = vadd.f32 %v3238_v20, %v3237_v53  ;;  %v3233_v57 = vpop.f32.mrb[34].mxu0 }
 0xcf2   :  { %v3244_v58 = vsel %vm475_vm3, %v3233_v57, 0.0  ;;  %v3919_v12 = vpop.f32.mrb[35].mxu0 }
 0xcf3   :  { %v3240_v59 = vrot.slane %v3239_v55, 2  ;;  %v3245_v60 = vrot.slane %v3244_v58, 4 }
 0xcf5   :  { %v3241_v52 = vadd.f32 %v3240_v59, %v3239_v55  ;;  %v3246_v61 = vadd.f32 %v3245_v60, %v3244_v58 }
 0xcf7   :  { %v3247_v62 = vrot.slane %v3246_v61, 2  ;;  %v3242_v63 = vrot.slane %v3241_v52, 1 }
 0xcf9   :  { %v3248_v35 = vadd.f32 %v3247_v62, %v3246_v61  ;;  %v3243_v1 = vadd.f32 %v3242_v63, %v3241_v52 }
 0xcfb   :  { %v3249_v0 = vrot.slane %v3248_v35, 1 }
 0xcfd   :  { %v3250_v2 = vadd.f32 %v3249_v0, %v3248_v35 }
 0xcff   :  { %v3265_v37 = vsel %vm3264_vm6, %v3250_v2, %v3243_v1 }
 0xd00   :  { %3929 = vmatmul.mubr.msk.f32.vlgmr.msra.gmra.mrb[32].mxu1 %vm475_vm3, %v3265_v37 }
 0xdd3   :  { %v3334_v3 = vpop.f32.mrb[32].mxu1 }
 0xdd4   :  { %v3335_v41 = vadd.f32 %v3426_v5, %v3334_v3  ;;  %v3930_v4 = vpop.f32.mrb[33].mxu1 }
 0xdd6   :  { %4211 = vtanh.f32 %v3335_v41 }
 0xde0   :  { %v4212_v6 = vpop.eup %4211 }
 0xde1   :  { %3340 = vst.msk [vmem:[#allocation21] sm:$0x3] %vm3339_vm7, %v4212_v6 }
 0xde2   :  { %4466 = shalt.err (!%p4463_p8)
}
 0xde3   :  { %s4467_s26 = scalar_lea.hbm %s5185_s19, 32 }
 0xde4   :  { %p4468_p9 = scmp.ne.s32.totalorder %s5185_s19, %s4467_s26  ;;  %p4471_p10 = scmp.lt.u32.totalorder %s4467_s26, %s5185_s19 }
 0xde6   :  { %p4473_p11 = pnand %p4471_p10, %p4468_p9 }
 0xde8   :  { %4476 = shalt.err (!%p4473_p11)
}
 0xde9   :  { %3350 = dma.vmem_to_hbm [thread:$0]  %s3348_s12, 32, %s5185_s19, [#allocation5]  }
 0xdea   :  { %4489 = dma.done.wait [#allocation5], 32  }
 0xdeb   :  { %4490 = vsyncadd [#allocation5], 4294967264 }
 0xdec   :  { %3354 = vsyncpa [#allocation4], 1 }
 0xded   :  { %3355 = vsyncpa [#allocation7], 1 }
 0xdee   :  { %3356 = vsyncpa [#allocation10], 1 }
 0xdef   :  { %3357 = vsyncpa [#allocation13], 1 }
 0xdf0   :  { %3358 = vsyncpa [#allocation16], 1 }
 0xdf1   :  { %3359 = vsyncpa [#allocation19], 1 }
 0xdf2   :  { %3360 = vsyncpa [#allocation5], 1 }

</bundles_post_ra>
